<compile_context>
chip_gen: v6e
topology: v6e:2x2x1
jax: 0.10.0
libtpu: 0.0.40
codegen_flags: <defaults>
</compile_context>

<pallas_src>
import math

import jax
import jax.numpy as jnp
from jax.experimental import pallas as pl
from jax.experimental.pallas import tpu as pltpu


# ----------------------------------------------------------------------------
# Helpers
# ----------------------------------------------------------------------------
def _divisor_tile(n, target, mult=8):
    """Largest t <= min(n, target) with t % mult == 0 and n % t == 0, else n.

    Returning n (the full dim) is always legal for a BlockSpec; a multiple of
    `mult`(=8 sublanes) that divides n gives clean, unpadded row tiles.
    """
    t = min(n, max(int(target), 1))
    t -= t % mult
    while t >= mult:
        if n % t == 0:
            return t
        t -= mult
    return n


def _stable_sigmoid(x):
    """Numerically stable sigmoid (no inf intermediate for large |x|)."""
    z = jnp.exp(-jnp.abs(x))
    return jnp.where(x >= 0, 1.0 / (1.0 + z), z / (1.0 + z))


# ----------------------------------------------------------------------------
# Kernel 1: fused global-average-pool (x0, x2, x4) + squeeze-excite MLP
# ----------------------------------------------------------------------------
def csaf_pool_excite_pallas(x0, x2, x4, params, *, tile_rows=4096):
    """NHWC inputs -> per-image sigmoid channel weights of shape (N, 1, 3C)."""
    N, H, W, C = x0.shape
    HW = H * W
    C3 = 3 * C
    M = params["w2"].shape[0]
    inv_hw = 1.0 / float(HW)

    # Flatten spatial dims (contiguous view, free at XLA level).
    x0f = x0.reshape(N, HW, C)
    x2f = x2.reshape(N, HW, C)
    x4f = x4.reshape(N, HW, C)

    # Squeeze-excite params. w1 split per pooled-input group so no in-kernel
    # reshape of the (3, C) accumulator is needed.
    w1 = params["w1"].reshape(3, C, M)      # rows [x0 | x2 | x4] of (3C, M)
    b1 = params["b1"].reshape(1, M)
    w2 = params["w2"]                       # (M, M)
    b2 = params["b2"].reshape(1, M)
    w3 = params["w3"]                       # (M, 3C)
    b3 = params["b3"].reshape(1, C3)

    T = _divisor_tile(HW, tile_rows)        # rows of the flattened H*W axis
    R = HW // T

    def kernel(x0_ref, x2_ref, x4_ref, w1_ref, b1_ref, w2_ref, b2_ref,
               w3_ref, b3_ref, o_ref, acc0, acc2, acc4):
        r = pl.program_id(1)

        @pl.when(r == 0)
        def _init():
            acc0[...] = jnp.zeros_like(acc0)
            acc2[...] = jnp.zeros_like(acc2)
            acc4[...] = jnp.zeros_like(acc4)

        # Partial per-channel sums of this row tile (sublane reduction).
        acc0[...] += jnp.sum(x0_ref[...], axis=0, keepdims=True)
        acc2[...] += jnp.sum(x2_ref[...], axis=0, keepdims=True)
        acc4[...] += jnp.sum(x4_ref[...], axis=0, keepdims=True)

        @pl.when(r == pl.num_programs(1) - 1)
        def _finalize():
            m0 = acc0[...] * inv_hw          # (1, C) means
            m2 = acc2[...] * inv_hw
            m4 = acc4[...] * inv_hw
            # compress1 (1x1 conv) on the concatenated pooled vector.
            h = (jnp.dot(m0, w1_ref[0], preferred_element_type=jnp.float32)
                 + jnp.dot(m2, w1_ref[1], preferred_element_type=jnp.float32)
                 + jnp.dot(m4, w1_ref[2], preferred_element_type=jnp.float32)
                 + b1_ref[...])
            h = jnp.maximum(h, 0.0)
            # compress2
            h = jnp.dot(h, w2_ref[...],
                        preferred_element_type=jnp.float32) + b2_ref[...]
            h = jnp.maximum(h, 0.0)
            # excitation + sigmoid
            e = jnp.dot(h, w3_ref[...],
                        preferred_element_type=jnp.float32) + b3_ref[...]
            o_ref[...] = _stable_sigmoid(e)   # (1, 3C)

    xspec = pl.BlockSpec((None, T, C), lambda n, r: (n, r, 0))
    out = pl.pallas_call(
        kernel,
        out_shape=jax.ShapeDtypeStruct((N, 1, C3), jnp.float32),
        grid=(N, R),
        in_specs=[
            xspec, xspec, xspec,
            pl.BlockSpec((3, C, M), lambda n, r: (0, 0, 0)),
            pl.BlockSpec((1, M), lambda n, r: (0, 0)),
            pl.BlockSpec((M, M), lambda n, r: (0, 0)),
            pl.BlockSpec((1, M), lambda n, r: (0, 0)),
            pl.BlockSpec((M, C3), lambda n, r: (0, 0)),
            pl.BlockSpec((1, C3), lambda n, r: (0, 0)),
        ],
        out_specs=pl.BlockSpec((None, 1, C3), lambda n, r: (n, 0, 0)),
        scratch_shapes=[pltpu.VMEM((1, C), jnp.float32)] * 3,
        compiler_params=pltpu.CompilerParams(
            dimension_semantics=("parallel", "arbitrary")),
    )(x0f, x2f, x4f, w1, b1, w2, b2, w3, b3)
    return out


# ----------------------------------------------------------------------------
# Kernel 2: lane-dense weighted combine  y = x0*w0 + x2*w2 + x4*w4
# ----------------------------------------------------------------------------
def csaf_combine_pallas(x0, x2, x4, w, *, tile_rows=None):
    """x*: NHWC (N,H,W,C); w: (N, 3, C) per-(image, branch) channel scales."""
    N, H, W, C = x0.shape
    WC = W * C
    if tile_rows is None:
        # ~1 MiB per input block; 4 arrays x double buffering ~= 8 MiB VMEM.
        tile_rows = max(8, (1 << 20) // (WC * 4))
    TH = _divisor_tile(H, tile_rows)
    RH = H // TH

    # Lane-dense view: last axis W*C (>=128 for realistic shapes) so stores
    # are unmasked full-lane vst instead of C(<128)-lane masked stores.
    x0f = x0.reshape(N, H, WC)
    x2f = x2.reshape(N, H, WC)
    x4f = x4.reshape(N, H, WC)
    # Pre-tile channel weights along W (channel-fastest, matches the view).
    wt = jnp.tile(w, (1, 1, W))             # (N, 3, W*C), tiny

    def kernel(x0_ref, x2_ref, x4_ref, w_ref, o_ref):
        o_ref[...] = (x0_ref[...] * w_ref[0]
                      + x2_ref[...] * w_ref[1]
                      + x4_ref[...] * w_ref[2])

    xspec = pl.BlockSpec((None, TH, WC), lambda n, h: (n, h, 0))
    out = pl.pallas_call(
        kernel,
        out_shape=jax.ShapeDtypeStruct((N, H, WC), jnp.float32),
        grid=(N, RH),
        in_specs=[xspec, xspec, xspec,
                  pl.BlockSpec((None, 3, WC), lambda n, h: (n, 0, 0))],
        out_specs=pl.BlockSpec((None, TH, WC), lambda n, h: (n, h, 0)),
        compiler_params=pltpu.CompilerParams(
            dimension_semantics=("parallel", "parallel")),
    )(x0f, x2f, x4f, wt)
    return out.reshape(N, H, W, C)


# ----------------------------------------------------------------------------
# Public forward (NCHW in / NCHW out, matching the PyTorch module)
# ----------------------------------------------------------------------------
def csaf_forward(params, x0, x2, x4, *, pool_tile_rows=4096,
                 combine_tile_rows=None):
    to_nhwc = lambda t: jnp.transpose(t, (0, 2, 3, 1)).astype(jnp.float32)
    x0n, x2n, x4n = (to_nhwc(t) for t in (x0, x2, x4))
    N, H, W, C = x0n.shape

    e = csaf_pool_excite_pallas(x0n, x2n, x4n, params,
                                tile_rows=pool_tile_rows)       # (N, 1, 3C)
    w = e.reshape(N, 3, C)                                      # torch.chunk order
    y = csaf_combine_pallas(x0n, x2n, x4n, w,
                            tile_rows=combine_tile_rows)        # NHWC
    return jnp.transpose(y, (0, 3, 1, 2))                       # NCHW


# ----------------------------------------------------------------------------
# Parameter init (mirrors nn.Conv2d default fan-in uniform; 1x1 kernels)
# ----------------------------------------------------------------------------
def init_csaf_params(key, in_chnls, ratio=4):
    mid = in_chnls // ratio
    k = jax.random.split(key, 6)

    def u(k_, shape, fan_in):
        b = 1.0 / math.sqrt(fan_in)
        return jax.random.uniform(k_, shape, jnp.float32, -b, b)

    return {
        "w1": u(k[0], (in_chnls, mid), in_chnls),   # compress1
        "b1": u(k[1], (mid,), in_chnls),
        "w2": u(k[2], (mid, mid), mid),             # compress2
        "b2": u(k[3], (mid,), mid),
        "w3": u(k[4], (mid, in_chnls), mid),        # excitation
        "b3": u(k[5], (in_chnls,), mid),
    }


# ----------------------------------------------------------------------------
# Plain-JAX reference (for correctness verification only)
# ----------------------------------------------------------------------------
def csaf_reference(params, x0, x2, x4):
    gap = lambda t: jnp.mean(t, axis=(2, 3))                    # NCHW -> (N, C)
    s = jnp.concatenate([gap(x0), gap(x2), gap(x4)], axis=1)    # (N, 3C)
    h = jnp.maximum(s @ params["w1"] + params["b1"], 0.0)
    h = jnp.maximum(h @ params["w2"] + params["b2"], 0.0)
    e = jax.nn.sigmoid(h @ params["w3"] + params["b3"])         # (N, 3C)
    C = x0.shape[1]
    w0, w2_, w4 = e[:, :C], e[:, C:2 * C], e[:, 2 * C:]
    bc = lambda v: v[:, :, None, None]
    return x0 * bc(w0) + x2 * bc(w2_) + x4 * bc(w4)


# ----------------------------------------------------------------------------
# Demo
# ----------------------------------------------------------------------------
if __name__ == "__main__":
    N, C, H, W = 2, 8, 32, 32        # CSAF in_chnls = 3*C = 24, ratio=4 -> mid=6
    key = jax.random.PRNGKey(0)
    kp, k0, k2, k4 = jax.random.split(key, 4)
    params = init_csaf_params(kp, 3 * C, ratio=4)

    x0 = jax.random.normal(k0, (N, C, H, W), jnp.float32)
    x2 = jax.random.normal(k2, (N, C, H, W), jnp.float32)
    x4 = jax.random.normal(k4, (N, C, H, W), jnp.float32)

    # Small tile targets so the demo exercises the multi-step accumulation /
    # pipelined paths (production defaults use larger tiles).
    fwd = jax.jit(lambda p, a, b, c: csaf_forward(
        p, a, b, c, pool_tile_rows=128, combine_tile_rows=8))

    out = fwd(params, x0, x2, x4)
    jax.block_until_ready(out)

    ref = csaf_reference(params, x0, x2, x4)
    assert out.shape == (N, C, H, W)
    assert bool(jnp.isfinite(out).all())
    max_err = float(jnp.max(jnp.abs(out - ref)))
    assert max_err < 2e-4, f"mismatch vs reference: max abs err {max_err}"
    print("KERNEL_OK")
</pallas_src>

<mosaic_0001>
module attributes {stable_mosaic.version = 11 : i64} {
  func.func @kernel(%arg0: i32, %arg1: i32, %arg2: memref<1x128x8xf32, #tpu.memory_space<vmem>>, %arg3: memref<1x128x8xf32, #tpu.memory_space<vmem>>, %arg4: memref<1x128x8xf32, #tpu.memory_space<vmem>>, %arg5: memref<3x8x6xf32, #tpu.memory_space<vmem>>, %arg6: memref<1x6xf32, #tpu.memory_space<vmem>>, %arg7: memref<6x6xf32, #tpu.memory_space<vmem>>, %arg8: memref<1x6xf32, #tpu.memory_space<vmem>>, %arg9: memref<6x24xf32, #tpu.memory_space<vmem>>, %arg10: memref<1x24xf32, #tpu.memory_space<vmem>>, %arg11: memref<1x1x24xf32, #tpu.memory_space<vmem>>, %arg12: memref<1x8xf32, #tpu.memory_space<vmem>>, %arg13: memref<1x8xf32, #tpu.memory_space<vmem>>, %arg14: memref<1x8xf32, #tpu.memory_space<vmem>>) attributes {dimension_semantics = [#tpu.dimension_semantics<parallel>, #tpu.dimension_semantics<arbitrary>], iteration_bounds = array<i64: 2, 8>, scalar_prefetch = 0 : i64, scratch_operands = 3 : i64, tpu.core_type = #tpu.core_type<tc>, window_params = [{transform_indices = @transform_0, window_bounds = array<i64: 1, 128, 8>}, {transform_indices = @transform_1, window_bounds = array<i64: 1, 128, 8>}, {transform_indices = @transform_2, window_bounds = array<i64: 1, 128, 8>}, {pipeline_mode = #tpu.pipeline_mode<synchronous>, transform_indices = @transform_3, window_bounds = array<i64: 3, 8, 6>}, {pipeline_mode = #tpu.pipeline_mode<synchronous>, transform_indices = @transform_4, window_bounds = array<i64: 1, 6>}, {pipeline_mode = #tpu.pipeline_mode<synchronous>, transform_indices = @transform_5, window_bounds = array<i64: 6, 6>}, {pipeline_mode = #tpu.pipeline_mode<synchronous>, transform_indices = @transform_6, window_bounds = array<i64: 1, 6>}, {pipeline_mode = #tpu.pipeline_mode<synchronous>, transform_indices = @transform_7, window_bounds = array<i64: 6, 24>}, {pipeline_mode = #tpu.pipeline_mode<synchronous>, transform_indices = @transform_8, window_bounds = array<i64: 1, 24>}, {transform_indices = @transform_9, window_bounds = array<i64: 1, 1, 24>}]} {
    %c0_i32 = arith.constant 0 : i32
    %0 = arith.cmpi eq, %arg1, %c0_i32 : i32
    %1 = arith.extui %0 : i1 to i32
    %c0_i32_0 = arith.constant 0 : i32
    %2 = arith.cmpi ne, %1, %c0_i32_0 : i32
    scf.if %2 {
      %cst_24 = arith.constant 0.000000e+00 : f32
      %27 = vector.broadcast %cst_24 : f32 to vector<1x8xf32>
      %c0_25 = arith.constant 0 : index
      %c0_26 = arith.constant 0 : index
      %28 = vector.load %arg12[%c0_25, %c0_26] : memref<1x8xf32, #tpu.memory_space<vmem>>, vector<1x8xf32>
      tpu.vector_store %arg12[%c0_25, %c0_26], %27 {strides = array<i32>} : memref<1x8xf32, #tpu.memory_space<vmem>>, vector<1x8xf32>,
      %cst_27 = arith.constant 0.000000e+00 : f32
      %29 = vector.broadcast %cst_27 : f32 to vector<1x8xf32>
      %c0_28 = arith.constant 0 : index
      %c0_29 = arith.constant 0 : index
      %30 = vector.load %arg13[%c0_28, %c0_29] : memref<1x8xf32, #tpu.memory_space<vmem>>, vector<1x8xf32>
      tpu.vector_store %arg13[%c0_28, %c0_29], %29 {strides = array<i32>} : memref<1x8xf32, #tpu.memory_space<vmem>>, vector<1x8xf32>,
      %cst_30 = arith.constant 0.000000e+00 : f32
      %31 = vector.broadcast %cst_30 : f32 to vector<1x8xf32>
      %c0_31 = arith.constant 0 : index
      %c0_32 = arith.constant 0 : index
      %32 = vector.load %arg14[%c0_31, %c0_32] : memref<1x8xf32, #tpu.memory_space<vmem>>, vector<1x8xf32>
      tpu.vector_store %arg14[%c0_31, %c0_32], %31 {strides = array<i32>} : memref<1x8xf32, #tpu.memory_space<vmem>>, vector<1x8xf32>,
    } else {
    }
    %c0 = arith.constant 0 : index
    %c0_1 = arith.constant 0 : index
    %3 = vector.load %arg12[%c0, %c0_1] : memref<1x8xf32, #tpu.memory_space<vmem>>, vector<1x8xf32>
    %c0_2 = arith.constant 0 : index
    %c0_3 = arith.constant 0 : index
    %c0_4 = arith.constant 0 : index
    %4 = vector.load %arg2[%c0_2, %c0_3, %c0_4] : memref<1x128x8xf32, #tpu.memory_space<vmem>>, vector<1x128x8xf32>
    %5 = vector.shape_cast %4 : vector<1x128x8xf32> to vector<128x8xf32>
    %cst = arith.constant dense<0.000000e+00> : vector<8xf32>
    %6 = vector.multi_reduction <add>, %5, %cst [0] : vector<128x8xf32> to vector<8xf32>
    %7 = vector.shape_cast %6 : vector<8xf32> to vector<1x8xf32>
    %8 = arith.addf %3, %7 : vector<1x8xf32>
    %c0_5 = arith.constant 0 : index
    %c0_6 = arith.constant 0 : index
    %9 = vector.load %arg12[%c0_5, %c0_6] : memref<1x8xf32, #tpu.memory_space<vmem>>, vector<1x8xf32>
    tpu.vector_store %arg12[%c0_5, %c0_6], %8 {strides = array<i32>} : memref<1x8xf32, #tpu.memory_space<vmem>>, vector<1x8xf32>,
    %c0_7 = arith.constant 0 : index
    %c0_8 = arith.constant 0 : index
    %10 = vector.load %arg13[%c0_7, %c0_8] : memref<1x8xf32, #tpu.memory_space<vmem>>, vector<1x8xf32>
    %c0_9 = arith.constant 0 : index
    %c0_10 = arith.constant 0 : index
    %c0_11 = arith.constant 0 : index
    %11 = vector.load %arg3[%c0_9, %c0_10, %c0_11] : memref<1x128x8xf32, #tpu.memory_space<vmem>>, vector<1x128x8xf32>
    %12 = vector.shape_cast %11 : vector<1x128x8xf32> to vector<128x8xf32>
    %cst_12 = arith.constant dense<0.000000e+00> : vector<8xf32>
    %13 = vector.multi_reduction <add>, %12, %cst_12 [0] : vector<128x8xf32> to vector<8xf32>
    %14 = vector.shape_cast %13 : vector<8xf32> to vector<1x8xf32>
    %15 = arith.addf %10, %14 : vector<1x8xf32>
    %c0_13 = arith.constant 0 : index
    %c0_14 = arith.constant 0 : index
    %16 = vector.load %arg13[%c0_13, %c0_14] : memref<1x8xf32, #tpu.memory_space<vmem>>, vector<1x8xf32>
    tpu.vector_store %arg13[%c0_13, %c0_14], %15 {strides = array<i32>} : memref<1x8xf32, #tpu.memory_space<vmem>>, vector<1x8xf32>,
    %c0_15 = arith.constant 0 : index
    %c0_16 = arith.constant 0 : index
    %17 = vector.load %arg14[%c0_15, %c0_16] : memref<1x8xf32, #tpu.memory_space<vmem>>, vector<1x8xf32>
    %c0_17 = arith.constant 0 : index
    %c0_18 = arith.constant 0 : index
    %c0_19 = arith.constant 0 : index
    %18 = vector.load %arg4[%c0_17, %c0_18, %c0_19] : memref<1x128x8xf32, #tpu.memory_space<vmem>>, vector<1x128x8xf32>
    %19 = vector.shape_cast %18 : vector<1x128x8xf32> to vector<128x8xf32>
    %cst_20 = arith.constant dense<0.000000e+00> : vector<8xf32>
    %20 = vector.multi_reduction <add>, %19, %cst_20 [0] : vector<128x8xf32> to vector<8xf32>
    %21 = vector.shape_cast %20 : vector<8xf32> to vector<1x8xf32>
    %22 = arith.addf %17, %21 : vector<1x8xf32>
    %c0_21 = arith.constant 0 : index
    %c0_22 = arith.constant 0 : index
    %23 = vector.load %arg14[%c0_21, %c0_22] : memref<1x8xf32, #tpu.memory_space<vmem>>, vector<1x8xf32>
    tpu.vector_store %arg14[%c0_21, %c0_22], %22 {strides = array<i32>} : memref<1x8xf32, #tpu.memory_space<vmem>>, vector<1x8xf32>,
    %c7_i32 = arith.constant 7 : i32
    %24 = arith.cmpi eq, %arg1, %c7_i32 : i32
    %25 = arith.extui %24 : i1 to i32
    %c0_i32_23 = arith.constant 0 : i32
    %26 = arith.cmpi ne, %25, %c0_i32_23 : i32
    scf.if %26 {
      %c0_24 = arith.constant 0 : index
      %c0_25 = arith.constant 0 : index
      %27 = vector.load %arg12[%c0_24, %c0_25] : memref<1x8xf32, #tpu.memory_space<vmem>>, vector<1x8xf32>
      %cst_26 = arith.constant 9.765625E-4 : f32
      %28 = vector.broadcast %cst_26 : f32 to vector<1x8xf32>
      %29 = arith.mulf %27, %28 : vector<1x8xf32>
      %c0_27 = arith.constant 0 : index
      %c0_28 = arith.constant 0 : index
      %30 = vector.load %arg13[%c0_27, %c0_28] : memref<1x8xf32, #tpu.memory_space<vmem>>, vector<1x8xf32>
      %cst_29 = arith.constant 9.765625E-4 : f32
      %31 = vector.broadcast %cst_29 : f32 to vector<1x8xf32>
      %32 = arith.mulf %30, %31 : vector<1x8xf32>
      %c0_30 = arith.constant 0 : index
      %c0_31 = arith.constant 0 : index
      %33 = vector.load %arg14[%c0_30, %c0_31] : memref<1x8xf32, #tpu.memory_space<vmem>>, vector<1x8xf32>
      %cst_32 = arith.constant 9.765625E-4 : f32
      %34 = vector.broadcast %cst_32 : f32 to vector<1x8xf32>
      %35 = arith.mulf %33, %34 : vector<1x8xf32>
      %c0_33 = arith.constant 0 : index
      %c0_34 = arith.constant 0 : index
      %c0_35 = arith.constant 0 : index
      %36 = vector.load %arg5[%c0_33, %c0_34, %c0_35] : memref<3x8x6xf32, #tpu.memory_space<vmem>>, vector<1x8x6xf32>
      %37 = vector.shape_cast %36 : vector<1x8x6xf32> to vector<8x6xf32>
      %cst_36 = arith.constant dense<0.000000e+00> : vector<1x6xf32>
      %38 = tpu.matmul %29, %37, %cst_36 {dimension_numbers = #tpu.dot_dimension_numbers<[1], [0], [0], [1], [0, 0, 1, 1], [], []>} : vector<1x8xf32>, vector<8x6xf32>, vector<1x6xf32> -> vector<1x6xf32>
      %c1 = arith.constant 1 : index
      %c0_37 = arith.constant 0 : index
      %c0_38 = arith.constant 0 : index
      %39 = vector.load %arg5[%c1, %c0_37, %c0_38] : memref<3x8x6xf32, #tpu.memory_space<vmem>>, vector<1x8x6xf32>
      %40 = vector.shape_cast %39 : vector<1x8x6xf32> to vector<8x6xf32>
      %cst_39 = arith.constant dense<0.000000e+00> : vector<1x6xf32>
      %41 = tpu.matmul %32, %40, %cst_39 {dimension_numbers = #tpu.dot_dimension_numbers<[1], [0], [0], [1], [0, 0, 1, 1], [], []>} : vector<1x8xf32>, vector<8x6xf32>, vector<1x6xf32> -> vector<1x6xf32>
      %42 = arith.addf %38, %41 : vector<1x6xf32>
      %c2 = arith.constant 2 : index
      %c0_40 = arith.constant 0 : index
      %c0_41 = arith.constant 0 : index
      %43 = vector.load %arg5[%c2, %c0_40, %c0_41] : memref<3x8x6xf32, #tpu.memory_space<vmem>>, vector<1x8x6xf32>
      %44 = vector.shape_cast %43 : vector<1x8x6xf32> to vector<8x6xf32>
      %cst_42 = arith.constant dense<0.000000e+00> : vector<1x6xf32>
      %45 = tpu.matmul %35, %44, %cst_42 {dimension_numbers = #tpu.dot_dimension_numbers<[1], [0], [0], [1], [0, 0, 1, 1], [], []>} : vector<1x8xf32>, vector<8x6xf32>, vector<1x6xf32> -> vector<1x6xf32>
      %46 = arith.addf %42, %45 : vector<1x6xf32>
      %c0_43 = arith.constant 0 : index
      %c0_44 = arith.constant 0 : index
      %47 = vector.load %arg6[%c0_43, %c0_44] : memref<1x6xf32, #tpu.memory_space<vmem>>, vector<1x6xf32>
      %48 = arith.addf %46, %47 : vector<1x6xf32>
      %cst_45 = arith.constant 0.000000e+00 : f32
      %49 = vector.broadcast %cst_45 : f32 to vector<1x6xf32>
      %50 = arith.maximumf %48, %49 : vector<1x6xf32>
      %c0_46 = arith.constant 0 : index
      %c0_47 = arith.constant 0 : index
      %51 = vector.load %arg7[%c0_46, %c0_47] : memref<6x6xf32, #tpu.memory_space<vmem>>, vector<6x6xf32>
      %cst_48 = arith.constant dense<0.000000e+00> : vector<1x6xf32>
      %52 = tpu.matmul %50, %51, %cst_48 {dimension_numbers = #tpu.dot_dimension_numbers<[1], [0], [0], [1], [0, 0, 1, 1], [], []>} : vector<1x6xf32>, vector<6x6xf32>, vector<1x6xf32> -> vector<1x6xf32>
      %c0_49 = arith.constant 0 : index
      %c0_50 = arith.constant 0 : index
      %53 = vector.load %arg8[%c0_49, %c0_50] : memref<1x6xf32, #tpu.memory_space<vmem>>, vector<1x6xf32>
      %54 = arith.addf %52, %53 : vector<1x6xf32>
      %cst_51 = arith.constant 0.000000e+00 : f32
      %55 = vector.broadcast %cst_51 : f32 to vector<1x6xf32>
      %56 = arith.maximumf %54, %55 : vector<1x6xf32>
      %c0_52 = arith.constant 0 : index
      %c0_53 = arith.constant 0 : index
      %57 = vector.load %arg9[%c0_52, %c0_53] : memref<6x24xf32, #tpu.memory_space<vmem>>, vector<6x24xf32>
      %cst_54 = arith.constant dense<0.000000e+00> : vector<1x24xf32>
      %58 = tpu.matmul %56, %57, %cst_54 {dimension_numbers = #tpu.dot_dimension_numbers<[1], [0], [0], [1], [0, 0, 1, 1], [], []>} : vector<1x6xf32>, vector<6x24xf32>, vector<1x24xf32> -> vector<1x24xf32>
      %c0_55 = arith.constant 0 : index
      %c0_56 = arith.constant 0 : index
      %59 = vector.load %arg10[%c0_55, %c0_56] : memref<1x24xf32, #tpu.memory_space<vmem>>, vector<1x24xf32>
      %60 = arith.addf %58, %59 : vector<1x24xf32>
      %61 = math.absf %60 : vector<1x24xf32>
      %cst_57 = arith.constant 0.000000e+00 : f32
      %62 = vector.broadcast %cst_57 : f32 to vector<1x24xf32>
      %63 = arith.subf %62, %61 : vector<1x24xf32>
      %64 = math.exp %63 : vector<1x24xf32>
      %cst_58 = arith.constant 0.000000e+00 : f32
      %65 = vector.broadcast %cst_58 : f32 to vector<1x24xf32>
      %66 = arith.cmpf oge, %60, %65 : vector<1x24xf32>
      %cst_59 = arith.constant 1.000000e+00 : f32
      %67 = vector.broadcast %cst_59 : f32 to vector<1x24xf32>
      %68 = arith.addf %67, %64 : vector<1x24xf32>
      %cst_60 = arith.constant 1.000000e+00 : f32
      %69 = vector.broadcast %cst_60 : f32 to vector<1x24xf32>
      %70 = arith.divf %69, %68 : vector<1x24xf32>
      %cst_61 = arith.constant 1.000000e+00 : f32
      %71 = vector.broadcast %cst_61 : f32 to vector<1x24xf32>
      %72 = arith.addf %71, %64 : vector<1x24xf32>
      %73 = arith.divf %64, %72 : vector<1x24xf32>
      %74 = arith.select %66, %70, %73 : vector<1x24xi1>, vector<1x24xf32>
      %c0_62 = arith.constant 0 : index
      %c0_63 = arith.constant 0 : index
      %c0_64 = arith.constant 0 : index
      %75 = vector.load %arg11[%c0_62, %c0_63, %c0_64] : memref<1x1x24xf32, #tpu.memory_space<vmem>>, vector<1x1x24xf32>
      %76 = vector.shape_cast %75 : vector<1x1x24xf32> to vector<1x24xf32>
      %77 = vector.shape_cast %74 : vector<1x24xf32> to vector<1x1x24xf32>
      tpu.vector_store %arg11[%c0_62, %c0_63, %c0_64], %77 {strides = array<i32>} : memref<1x1x24xf32, #tpu.memory_space<vmem>>, vector<1x1x24xf32>,
    } else {
    }
    return
  }
  func.func @transform_0(%arg0: i32, %arg1: i32) -> (i32, i32, i32) {
    %c0_i32 = arith.constant 0 : i32
    %c0_i32_0 = arith.constant 0 : i32
    return %arg0, %arg1, %c0_i32 : i32, i32, i32
  }
  func.func @transform_1(%arg0: i32, %arg1: i32) -> (i32, i32, i32) {
    %c0_i32 = arith.constant 0 : i32
    %c0_i32_0 = arith.constant 0 : i32
    return %arg0, %arg1, %c0_i32 : i32, i32, i32
  }
  func.func @transform_2(%arg0: i32, %arg1: i32) -> (i32, i32, i32) {
    %c0_i32 = arith.constant 0 : i32
    %c0_i32_0 = arith.constant 0 : i32
    return %arg0, %arg1, %c0_i32 : i32, i32, i32
  }
  func.func @transform_3(%arg0: i32, %arg1: i32) -> (i32, i32, i32) {
    %c0_i32 = arith.constant 0 : i32
    %c0_i32_0 = arith.constant 0 : i32
    %c0_i32_1 = arith.constant 0 : i32
    %c0_i32_2 = arith.constant 0 : i32
    return %c0_i32, %c0_i32_0, %c0_i32_1 : i32, i32, i32
  }
  func.func @transform_4(%arg0: i32, %arg1: i32) -> (i32, i32) {
    %c0_i32 = arith.constant 0 : i32
    %c0_i32_0 = arith.constant 0 : i32
    %c0_i32_1 = arith.constant 0 : i32
    return %c0_i32, %c0_i32_0 : i32, i32
  }
  func.func @transform_5(%arg0: i32, %arg1: i32) -> (i32, i32) {
    %c0_i32 = arith.constant 0 : i32
    %c0_i32_0 = arith.constant 0 : i32
    %c0_i32_1 = arith.constant 0 : i32
    return %c0_i32, %c0_i32_0 : i32, i32
  }
  func.func @transform_6(%arg0: i32, %arg1: i32) -> (i32, i32) {
    %c0_i32 = arith.constant 0 : i32
    %c0_i32_0 = arith.constant 0 : i32
    %c0_i32_1 = arith.constant 0 : i32
    return %c0_i32, %c0_i32_0 : i32, i32
  }
  func.func @transform_7(%arg0: i32, %arg1: i32) -> (i32, i32) {
    %c0_i32 = arith.constant 0 : i32
    %c0_i32_0 = arith.constant 0 : i32
    %c0_i32_1 = arith.constant 0 : i32
    return %c0_i32, %c0_i32_0 : i32, i32
  }
  func.func @transform_8(%arg0: i32, %arg1: i32) -> (i32, i32) {
    %c0_i32 = arith.constant 0 : i32
    %c0_i32_0 = arith.constant 0 : i32
    %c0_i32_1 = arith.constant 0 : i32
    return %c0_i32, %c0_i32_0 : i32, i32
  }
  func.func @transform_9(%arg0: i32, %arg1: i32) -> (i32, i32, i32) {
    %c0_i32 = arith.constant 0 : i32
    %c0_i32_0 = arith.constant 0 : i32
    %c0_i32_1 = arith.constant 0 : i32
    return %arg0, %c0_i32, %c0_i32_0 : i32, i32, i32
  }
}

module attributes {stable_mosaic.version = 11 : i64} {
  func.func @kernel(%arg0: i32, %arg1: i32, %arg2: memref<1x8x256xf32, #tpu.memory_space<vmem>>, %arg3: memref<1x8x256xf32, #tpu.memory_space<vmem>>, %arg4: memref<1x8x256xf32, #tpu.memory_space<vmem>>, %arg5: memref<1x3x256xf32, #tpu.memory_space<vmem>>, %arg6: memref<1x8x256xf32, #tpu.memory_space<vmem>>) attributes {dimension_semantics = [#tpu.dimension_semantics<parallel>, #tpu.dimension_semantics<parallel>], iteration_bounds = array<i64: 2, 4>, scalar_prefetch = 0 : i64, scratch_operands = 0 : i64, tpu.core_type = #tpu.core_type<tc>, window_params = [{transform_indices = @transform_0, window_bounds = array<i64: 1, 8, 256>}, {transform_indices = @transform_1, window_bounds = array<i64: 1, 8, 256>}, {transform_indices = @transform_2, window_bounds = array<i64: 1, 8, 256>}, {transform_indices = @transform_3, window_bounds = array<i64: 1, 3, 256>}, {transform_indices = @transform_4, window_bounds = array<i64: 1, 8, 256>}]} {
    %c0 = arith.constant 0 : index
    %c0_0 = arith.constant 0 : index
    %c0_1 = arith.constant 0 : index
    %0 = vector.load %arg2[%c0, %c0_0, %c0_1] : memref<1x8x256xf32, #tpu.memory_space<vmem>>, vector<1x8x256xf32>
    %1 = vector.shape_cast %0 : vector<1x8x256xf32> to vector<8x256xf32>
    %c0_2 = arith.constant 0 : index
    %c0_3 = arith.constant 0 : index
    %c0_4 = arith.constant 0 : index
    %2 = vector.load %arg5[%c0_2, %c0_3, %c0_4] : memref<1x3x256xf32, #tpu.memory_space<vmem>>, vector<1x1x256xf32>
    %3 = vector.shape_cast %2 : vector<1x1x256xf32> to vector<256xf32>
    %4 = vector.shape_cast %3 : vector<256xf32> to vector<1x256xf32>
    %5 = vector.broadcast %4 : vector<1x256xf32> to vector<8x256xf32>
    %6 = arith.mulf %1, %5 : vector<8x256xf32>
    %c0_5 = arith.constant 0 : index
    %c0_6 = arith.constant 0 : index
    %c0_7 = arith.constant 0 : index
    %7 = vector.load %arg3[%c0_5, %c0_6, %c0_7] : memref<1x8x256xf32, #tpu.memory_space<vmem>>, vector<1x8x256xf32>
    %8 = vector.shape_cast %7 : vector<1x8x256xf32> to vector<8x256xf32>
    %c0_8 = arith.constant 0 : index
    %c1 = arith.constant 1 : index
    %c0_9 = arith.constant 0 : index
    %9 = vector.load %arg5[%c0_8, %c1, %c0_9] : memref<1x3x256xf32, #tpu.memory_space<vmem>>, vector<1x1x256xf32>
    %10 = vector.shape_cast %9 : vector<1x1x256xf32> to vector<256xf32>
    %11 = vector.shape_cast %10 : vector<256xf32> to vector<1x256xf32>
    %12 = vector.broadcast %11 : vector<1x256xf32> to vector<8x256xf32>
    %13 = arith.mulf %8, %12 : vector<8x256xf32>
    %14 = arith.addf %6, %13 : vector<8x256xf32>
    %c0_10 = arith.constant 0 : index
    %c0_11 = arith.constant 0 : index
    %c0_12 = arith.constant 0 : index
    %15 = vector.load %arg4[%c0_10, %c0_11, %c0_12] : memref<1x8x256xf32, #tpu.memory_space<vmem>>, vector<1x8x256xf32>
    %16 = vector.shape_cast %15 : vector<1x8x256xf32> to vector<8x256xf32>
    %c0_13 = arith.constant 0 : index
    %c2 = arith.constant 2 : index
    %c0_14 = arith.constant 0 : index
    %17 = vector.load %arg5[%c0_13, %c2, %c0_14] : memref<1x3x256xf32, #tpu.memory_space<vmem>>, vector<1x1x256xf32>
    %18 = vector.shape_cast %17 : vector<1x1x256xf32> to vector<256xf32>
    %19 = vector.shape_cast %18 : vector<256xf32> to vector<1x256xf32>
    %20 = vector.broadcast %19 : vector<1x256xf32> to vector<8x256xf32>
    %21 = arith.mulf %16, %20 : vector<8x256xf32>
    %22 = arith.addf %14, %21 : vector<8x256xf32>
    %c0_15 = arith.constant 0 : index
    %c0_16 = arith.constant 0 : index
    %c0_17 = arith.constant 0 : index
    %23 = vector.load %arg6[%c0_15, %c0_16, %c0_17] : memref<1x8x256xf32, #tpu.memory_space<vmem>>, vector<1x8x256xf32>
    %24 = vector.shape_cast %23 : vector<1x8x256xf32> to vector<8x256xf32>
    %25 = vector.shape_cast %22 : vector<8x256xf32> to vector<1x8x256xf32>
    tpu.vector_store %arg6[%c0_15, %c0_16, %c0_17], %25 {strides = array<i32>} : memref<1x8x256xf32, #tpu.memory_space<vmem>>, vector<1x8x256xf32>,
    return
  }
  func.func @transform_0(%arg0: i32, %arg1: i32) -> (i32, i32, i32) {
    %c0_i32 = arith.constant 0 : i32
    %c0_i32_0 = arith.constant 0 : i32
    return %arg0, %arg1, %c0_i32 : i32, i32, i32
  }
  func.func @transform_1(%arg0: i32, %arg1: i32) -> (i32, i32, i32) {
    %c0_i32 = arith.constant 0 : i32
    %c0_i32_0 = arith.constant 0 : i32
    return %arg0, %arg1, %c0_i32 : i32, i32, i32
  }
  func.func @transform_2(%arg0: i32, %arg1: i32) -> (i32, i32, i32) {
    %c0_i32 = arith.constant 0 : i32
    %c0_i32_0 = arith.constant 0 : i32
    return %arg0, %arg1, %c0_i32 : i32, i32, i32
  }
  func.func @transform_3(%arg0: i32, %arg1: i32) -> (i32, i32, i32) {
    %c0_i32 = arith.constant 0 : i32
    %c0_i32_0 = arith.constant 0 : i32
    %c0_i32_1 = arith.constant 0 : i32
    return %arg0, %c0_i32, %c0_i32_0 : i32, i32, i32
  }
  func.func @transform_4(%arg0: i32, %arg1: i32) -> (i32, i32, i32) {
    %c0_i32 = arith.constant 0 : i32
    %c0_i32_0 = arith.constant 0 : i32
    return %arg0, %arg1, %c0_i32 : i32, i32, i32
  }
}

</mosaic_0001>

<bundles_post_ra>
// kernel: tile.7
= control target key start
LH: loop header
LB: loop body
LE: loop exit
PB: predicated region body
PF: predicated region fallthrough
CT: control target
= control target key end

     0   :  { %vm42_vm0 = vcmask 1042433   ;;  %vm77_vm1 = vcmask 1043459   ;;  %s120_s8 = smov 6  ;;  %s71_s13 = smov 6  ;;  %vm47_vm2 = vcmask 1044483   ;;  %vm52_vm3 = vcmask 1046533   ;;  %s1495_s0 = inlined_call_operand.vmem [shape: f32[2,3,32,8], index: 0, kind: input, shape index: {}]   ;;  %s1496_s1 = inlined_call_operand.vmem [shape: f32[2,3,256], index: 1, kind: output, shape index: {}]  }
   0x1   :  { %v833_v0 = vld [vmem:[%s1495_s0 + $0x8e] sm:$0x1]   ;;  %v835_v2 = vld [vmem:[%s1495_s0 + $0xbb] sm:$0x8]   ;;  %v825_v4 = vld [vmem:[%s1495_s0 + $0x8f] sm:$0x1]  }
   0x2   :  { %v834_v1 = vld [vmem:[%s1495_s0 + $0xbe] ss:$-16 sm:%s120_s8]   ;;  %v826_v5 = vld [vmem:[%s1495_s0 + $0xbf] ss:$-16 sm:%s71_s13]   ;;  %s89_s22 = smov 6  ;;  %s94_s23 = smov 24 }
   0x3   :  { %v123_v3 = vsel %vm42_vm0, %v834_v1, %v833_v0  ;;  %v827_v6 = vld [vmem:[%s1495_s0 + $0xbc] sm:$0x8]   ;;  %v74_v8 = vsel %vm42_vm0, %v826_v5, %v825_v4  ;;  %v828_v9 = vld [vmem:[%s1495_s0 + $0xe] sm:$0x1]   ;;  %s960_s24 = smov 112   ;;  %vm56_vm4 = vcmask 1047559  }
   0x4   :  { %v127_v7 = vsel %vm77_vm1, %v835_v2, %v123_v3  ;;  %v78_v10 = vsel %vm77_vm1, %v827_v6, %v74_v8  ;;  %v829_v11 = vld [vmem:[%s1495_s0 + $0x3e] ss:$-16 sm:%s89_s22]   ;;  %s99_s27 = smov 96  ;;  %s961_s30 = smov 120   ;;  %v820_v15 = vld [vmem:[%s1495_s0 + $0xf] sm:$0x1]  }
   0x5   :  { %128 = vrot.lane.b32.xlu1 %v127_v7, %s960_s24  ;;  %v832_v12 = vld [vmem:[%s1495_s0 + $0x77] sm:$0x80]   ;;  %79 = vrot.lane.b32.xlu0 %v78_v10, %s961_s30  ;;  %v92_v13 = vsel %vm42_vm0, %v829_v11, %v828_v9  ;;  %s40_s6 = smov 6  ;;  %s45_s7 = smov 24  ;;  %v824_v25 = vld [vmem:[%s1495_s0 + $0x78] sm:$0x80]  }
   0x6   :  { %v830_v14 = vld [vmem:[%s1495_s0 + $0xe] ss:$16 sm:%s94_s23]   ;;  %v821_v18 = vld [vmem:[%s1495_s0 + $0x3f] ss:$-16 sm:%s40_s6]   ;;  %s50_s12 = smov 96  ;;  %s169_s17 = smov 6 }
   0x7   :  { %v97_v16 = vsel %vm47_vm2, %v830_v14, %v92_v13  ;;  %v831_v17 = vld [vmem:[%s1495_s0 + $0xbe] ss:$-16 sm:%s99_s27]   ;;  %v43_v20 = vsel %vm42_vm0, %v821_v18, %v820_v15  ;;  %v822_v21 = vld [vmem:[%s1495_s0 + $0xf] ss:$16 sm:%s45_s7]   ;;  %s138_s18 = smov 6  ;;  %s143_s29 = smov 24 }
   0x8   :  { %v102_v19 = vsel %vm52_vm3, %v831_v17, %v97_v16  ;;  %v823_v22 = vld [vmem:[%s1495_s0 + $0xbf] ss:$-16 sm:%s50_s12]   ;;  %v48_v24 = vsel %vm47_vm2, %v822_v21, %v43_v20  ;;  %v841_v26 = vld [vmem:[%s1495_s0 + $0x8d] sm:$0x1]   ;;  %v843_v30 = vld [vmem:[%s1495_s0 + $0xba] sm:$0x8]  }
   0x9   :  { %v106_v23 = vsel %vm56_vm4, %v832_v12, %v102_v19  ;;  %v842_v27 = vld [vmem:[%s1495_s0 + $0xbd] ss:$-16 sm:%s169_s17]   ;;  %v53_v28 = vsel %vm52_vm3, %v823_v22, %v48_v24  ;;  %s148_s2 = smov 96  ;;  %s218_s7 = smov 6  ;;  %v849_v40 = vld [vmem:[%s1495_s0 + $0x8c] sm:$0x1]  }
   0xa   :  { %107 = vrot.lane.b32.xlu1 %v106_v23, %s960_s24  ;;  %v172_v29 = vsel %vm42_vm0, %v842_v27, %v841_v26  ;;  %v836_v31 = vld [vmem:[%s1495_s0 + $0xd] sm:$0x1]   ;;  %v57_v32 = vsel %vm56_vm4, %v824_v25, %v53_v28  ;;  %v840_v38 = vld [vmem:[%s1495_s0 + $0x76] sm:$0x80]   ;;  %s187_s11 = smov 6  ;;  %s192_s12 = smov 24 }
   0xb   :  { %v176_v33 = vsel %vm77_vm1, %v843_v30, %v172_v29  ;;  %v837_v34 = vld [vmem:[%s1495_s0 + $0x3d] ss:$-16 sm:%s138_s18]   ;;  %58 = vrot.lane.b32.xlu0 %v57_v32, %s961_s30  ;;  %v851_v42 = vld [vmem:[%s1495_s0 + $0xb9] sm:$0x8]   ;;  %s962_s19 = smov 104   ;;  %s197_s25 = smov 96 }
   0xc   :  { %v838_v35 = vld [vmem:[%s1495_s0 + $0xd] ss:$16 sm:%s143_s29]   ;;  %v141_v36 = vsel %vm42_vm0, %v837_v34, %v836_v31  ;;  %v850_v41 = vld [vmem:[%s1495_s0 + $0xbc] ss:$-16 sm:%s218_s7]   ;;  %s267_s29 = smov 6  ;;  %s246_s13 = smov 96 }
   0xd   :  { %v839_v37 = vld [vmem:[%s1495_s0 + $0xbd] ss:$-16 sm:%s148_s2]   ;;  %v146_v39 = vsel %vm47_vm2, %v838_v35, %v141_v36  ;;  %v221_v44 = vsel %vm42_vm0, %v850_v41, %v849_v40  ;;  %v844_v45 = vld [vmem:[%s1495_s0 + $0xc] sm:$0x1]   ;;  %s236_s2 = smov 6  ;;  %s963_s14 = smov 96  }
   0xe   :  { %177 = vrot.lane.b32.xlu1 %v176_v33, %s962_s19  ;;  %v151_v43 = vsel %vm52_vm3, %v839_v37, %v146_v39  ;;  %v845_v46 = vld [vmem:[%s1495_s0 + $0x3c] ss:$-16 sm:%s187_s11]   ;;  %v225_v48 = vsel %vm77_vm1, %v851_v42, %v221_v44  ;;  %v857_v54 = vld [vmem:[%s1495_s0 + $0x8b] sm:$0x1]   ;;  %s290_s24 = smov 24  ;;  %s964_s8 = smov 88  }
   0xf   :  { %v155_v47 = vsel %vm56_vm4, %v840_v38, %v151_v43  ;;  %v190_v49 = vsel %vm42_vm0, %v845_v46, %v844_v45  ;;  %v846_v50 = vld [vmem:[%s1495_s0 + $0xc] ss:$16 sm:%s192_s12]   ;;  %v859_v55 = vld [vmem:[%s1495_s0 + $0xb8] sm:$0x8]   ;;  %v852_v58 = vld [vmem:[%s1495_s0 + $0xb] sm:$0x1]  }
  0x10   :  { %v847_v51 = vld [vmem:[%s1495_s0 + $0xbc] ss:$-16 sm:%s197_s25]   ;;  %156 = vrot.lane.b32.xlu0 %v155_v47, %s962_s19  ;;  %v195_v52 = vsel %vm47_vm2, %v846_v50, %v190_v49  ;;  %s241_s12 = smov 24  ;;  %v856_v62 = vld [vmem:[%s1495_s0 + $0x74] sm:$0x80]   ;;  %s316_s19 = smov 6 }
  0x11   :  { %v848_v53 = vld [vmem:[%s1495_s0 + $0x75] sm:$0x80]   ;;  %v200_v56 = vsel %vm52_vm3, %v847_v51, %v195_v52  ;;  %v858_v57 = vld [vmem:[%s1495_s0 + $0xbb] ss:$-16 sm:%s267_s29]   ;;  %s285_s25 = smov 6  ;;  %s344_s26 = smov 96 }
  0x12   :  { %226 = vrot.lane.b32.xlu1 %v225_v48, %s963_s14  ;;  %v204_v59 = vsel %vm56_vm4, %v848_v53, %v200_v56  ;;  %v270_v60 = vsel %vm42_vm0, %v858_v57, %v857_v54  ;;  %v853_v61 = vld [vmem:[%s1495_s0 + $0x3b] ss:$-16 sm:%s236_s2]   ;;  %v865_v4 = vld [vmem:[%s1495_s0 + $0x8a] sm:$0x1]   ;;  %s295_s2 = smov 96  ;;  %s414_s3 = smov 6 }
  0x13   :  { %v274_v63 = vsel %vm77_vm1, %v859_v55, %v270_v60  ;;  %v239_v0 = vsel %vm42_vm0, %v853_v61, %v852_v58  ;;  %v854_v1 = vld [vmem:[%s1495_s0 + $0xb] ss:$16 sm:%s241_s12]   ;;  %v866_v5 = vld [vmem:[%s1495_s0 + $0xba] ss:$-16 sm:%s316_s19]   ;;  %s965_s4 = smov 80   ;;  %s388_s9 = smov 24 }
  0x14   :  { %v855_v2 = vld [vmem:[%s1495_s0 + $0xbb] ss:$-16 sm:%s246_s13]   ;;  %205 = vrot.lane.b32.xlu0 %v204_v59, %s963_s14  ;;  %v244_v3 = vsel %vm47_vm2, %v854_v1, %v239_v0  ;;  %v319_v7 = vsel %vm42_vm0, %v866_v5, %v865_v4  ;;  %v867_v8 = vld [vmem:[%s1495_s0 + $0xb7] sm:$0x8]   ;;  %s365_s13 = smov 6  ;;  %s334_s14 = smov 6 }
  0x15   :  { %v249_v6 = vsel %vm52_vm3, %v855_v2, %v244_v3  ;;  %v860_v9 = vld [vmem:[%s1495_s0 + $0xa] sm:$0x1]   ;;  %v864_v14 = vld [vmem:[%s1495_s0 + $0x73] sm:$0x80]   ;;  %v323_v15 = vsel %vm77_vm1, %v867_v8, %v319_v7  ;;  %v873_v18 = vld [vmem:[%s1495_s0 + $0x89] sm:$0x1]  }
  0x16   :  { %v861_v10 = vld [vmem:[%s1495_s0 + $0x3a] ss:$-16 sm:%s285_s25]   ;;  %275 = vrot.lane.b32.xlu1 %v274_v63, %s964_s8  ;;  %v253_v11 = vsel %vm56_vm4, %v856_v62, %v249_v6  ;;  %v875_v19 = vld [vmem:[%s1495_s0 + $0xb6] sm:$0x8]   ;;  %s393_s20 = smov 96  ;;  %s966_s27 = smov 72  }
  0x17   :  { %v288_v12 = vsel %vm42_vm0, %v861_v10, %v860_v9  ;;  %v862_v13 = vld [vmem:[%s1495_s0 + $0xa] ss:$16 sm:%s290_s24]   ;;  %v874_v21 = vld [vmem:[%s1495_s0 + $0xb9] ss:$-16 sm:%s365_s13]   ;;  %s339_s24 = smov 24  ;;  %s442_s10 = smov 96 }
  0x18   :  { %v293_v16 = vsel %vm47_vm2, %v862_v13, %v288_v12  ;;  %v863_v17 = vld [vmem:[%s1495_s0 + $0xba] ss:$-16 sm:%s295_s2]   ;;  %254 = vrot.lane.b32.xlu0 %v253_v11, %s964_s8  ;;  %v868_v22 = vld [vmem:[%s1495_s0 + $0x9] sm:$0x1]   ;;  %v368_v24 = vsel %vm42_vm0, %v874_v21, %v873_v18  ;;  %s383_s8 = smov 6  ;;  %s512_s15 = smov 6 }
  0x19   :  { %v298_v20 = vsel %vm52_vm3, %v863_v17, %v293_v16  ;;  %v869_v25 = vld [vmem:[%s1495_s0 + $0x39] ss:$-16 sm:%s334_s14]   ;;  %v372_v30 = vsel %vm77_vm1, %v875_v19, %v368_v24  ;;  %v881_v32 = vld [vmem:[%s1495_s0 + $0x88] sm:$0x1]   ;;  %v883_v34 = vld [vmem:[%s1495_s0 + $0xb5] sm:$0x8]  }
  0x1a   :  { %v302_v23 = vsel %vm56_vm4, %v864_v14, %v298_v20  ;;  %v870_v26 = vld [vmem:[%s1495_s0 + $0x9] ss:$16 sm:%s339_s24]   ;;  %324 = vrot.lane.b32.xlu1 %v323_v15, %s965_s4  ;;  %v337_v27 = vsel %vm42_vm0, %v869_v25, %v868_v22  ;;  %v876_v37 = vld [vmem:[%s1495_s0 + $0x8] sm:$0x1]   ;;  %s463_s24 = smov 6  ;;  %s486_s21 = smov 24 }
  0x1b   :  { %v871_v28 = vld [vmem:[%s1495_s0 + $0xb9] ss:$-16 sm:%s344_s26]   ;;  %v342_v31 = vsel %vm47_vm2, %v870_v26, %v337_v27  ;;  %v882_v33 = vld [vmem:[%s1495_s0 + $0xb8] ss:$-16 sm:%s414_s3]   ;;  %s432_s26 = smov 6  ;;  %s967_s22 = smov 64  }
  0x1c   :  { %v872_v29 = vld [vmem:[%s1495_s0 + $0x72] sm:$0x80]   ;;  %303 = vrot.lane.b32.xlu0 %v302_v23, %s965_s4  ;;  %v347_v35 = vsel %vm52_vm3, %v871_v28, %v342_v31  ;;  %v417_v36 = vsel %vm42_vm0, %v882_v33, %v881_v32  ;;  %v877_v38 = vld [vmem:[%s1495_s0 + $0x38] ss:$-16 sm:%s383_s8]   ;;  %s561_s30 = smov 6  ;;  %s530_s8 = smov 6 }
  0x1d   :  { %v351_v39 = vsel %vm56_vm4, %v872_v29, %v347_v35  ;;  %v386_v40 = vsel %vm42_vm0, %v877_v38, %v876_v37  ;;  %v878_v41 = vld [vmem:[%s1495_s0 + $0x8] ss:$16 sm:%s388_s9]   ;;  %v889_v45 = vld [vmem:[%s1495_s0 + $0x87] sm:$0x1]   ;;  %v891_v46 = vld [vmem:[%s1495_s0 + $0xb4] sm:$0x8]   ;;  %v421_v47 = vsel %vm77_vm1, %v883_v34, %v417_v36 }
  0x1e   :  { %v879_v42 = vld [vmem:[%s1495_s0 + $0xb8] ss:$-16 sm:%s393_s20]   ;;  %373 = vrot.lane.b32.xlu1 %v372_v30, %s966_s27  ;;  %v391_v43 = vsel %vm47_vm2, %v878_v41, %v386_v40  ;;  %v884_v50 = vld [vmem:[%s1495_s0 + $0x7] sm:$0x1]   ;;  %s437_s9 = smov 24  ;;  %s481_s20 = smov 6 }
  0x1f   :  { %v880_v44 = vld [vmem:[%s1495_s0 + $0x71] sm:$0x80]   ;;  %v396_v48 = vsel %vm52_vm3, %v879_v42, %v391_v43  ;;  %v890_v49 = vld [vmem:[%s1495_s0 + $0xb7] ss:$-16 sm:%s463_s24]   ;;  %v897_v59 = vld [vmem:[%s1495_s0 + $0x86] sm:$0x1]  }
  0x20   :  { %352 = vrot.lane.b32.xlu0 %v351_v39, %s966_s27  ;;  %v466_v51 = vsel %vm42_vm0, %v890_v49, %v889_v45  ;;  %v885_v52 = vld [vmem:[%s1495_s0 + $0x37] ss:$-16 sm:%s432_s26]   ;;  %v400_v54 = vsel %vm56_vm4, %v880_v44, %v396_v48  ;;  %s491_s27 = smov 96  ;;  %v892_v63 = vld [vmem:[%s1495_s0 + $0x6] sm:$0x1]   ;;  %s610_s26 = smov 6 }
  0x21   :  { %v888_v53 = vld [vmem:[%s1495_s0 + $0x70] sm:$0x80]   ;;  %v435_v55 = vsel %vm42_vm0, %v885_v52, %v884_v50  ;;  %v898_v60 = vld [vmem:[%s1495_s0 + $0xb6] ss:$-16 sm:%s512_s15]   ;;  %v470_v61 = vsel %vm77_vm1, %v891_v46, %v466_v51  ;;  %v905_v9 = vld [vmem:[%s1495_s0 + $0x85] sm:$0x1]  }
  0x22   :  { %v886_v56 = vld [vmem:[%s1495_s0 + $0x7] ss:$16 sm:%s437_s9]   ;;  %422 = vrot.lane.b32.xlu1 %v421_v47, %s967_s22  ;;  %v515_v1 = vsel %vm42_vm0, %v898_v60, %v897_v59  ;;  %v899_v2 = vld [vmem:[%s1495_s0 + $0xb3] sm:$0x8]   ;;  %s968_s15 = smov 56   ;;  %s579_s3 = smov 6 }
  0x23   :  { %v887_v57 = vld [vmem:[%s1495_s0 + $0xb7] ss:$-16 sm:%s442_s10]   ;;  %v440_v58 = vsel %vm47_vm2, %v886_v56, %v435_v55  ;;  %v893_v0 = vld [vmem:[%s1495_s0 + $0x36] ss:$-16 sm:%s481_s20]   ;;  %s535_s20 = smov 24  ;;  %v519_v13 = vsel %vm77_vm1, %v899_v2, %v515_v1  ;;  %s584_s4 = smov 24 }
  0x24   :  { %v445_v62 = vsel %vm52_vm3, %v887_v57, %v440_v58  ;;  %401 = vrot.lane.b32.xlu0 %v400_v54, %s967_s22  ;;  %v484_v3 = vsel %vm42_vm0, %v893_v0, %v892_v63  ;;  %v894_v4 = vld [vmem:[%s1495_s0 + $0x6] ss:$16 sm:%s486_s21]   ;;  %v900_v12 = vld [vmem:[%s1495_s0 + $0x5] sm:$0x1]   ;;  %s540_s21 = smov 96  ;;  %s969_s10 = smov 48  }
  0x25   :  { %v449_v5 = vsel %vm56_vm4, %v888_v53, %v445_v62  ;;  %v489_v6 = vsel %vm47_vm2, %v894_v4, %v484_v3  ;;  %v895_v7 = vld [vmem:[%s1495_s0 + $0xb6] ss:$-16 sm:%s491_s27]   ;;  %v906_v11 = vld [vmem:[%s1495_s0 + $0xb5] ss:$-16 sm:%s561_s30]   ;;  %s633_s2 = smov 24  ;;  %s677_s13 = smov 6 }
  0x26   :  { %v896_v8 = vld [vmem:[%s1495_s0 + $0x6f] sm:$0x80]   ;;  %471 = vrot.lane.b32.xlu1 %v470_v61, %s968_s15  ;;  %v494_v10 = vsel %vm52_vm3, %v895_v7, %v489_v6  ;;  %v901_v14 = vld [vmem:[%s1495_s0 + $0x35] ss:$-16 sm:%s530_s8]   ;;  %v564_v16 = vsel %vm42_vm0, %v906_v11, %v905_v9  ;;  %s708_s8 = smov 6  ;;  %s682_s14 = smov 24 }
  0x27   :  { %v902_v15 = vld [vmem:[%s1495_s0 + $0x5] ss:$16 sm:%s535_s20]   ;;  %v533_v18 = vsel %vm42_vm0, %v901_v14, %v900_v12  ;;  %v498_v20 = vsel %vm56_vm4, %v896_v8, %v494_v10  ;;  %v913_v23 = vld [vmem:[%s1495_s0 + $0x84] sm:$0x1]   ;;  %s659_s20 = smov 6  ;;  %s687_s19 = smov 96 }
  0x28   :  { %450 = vrot.lane.b32.xlu0 %v449_v5, %s968_s15  ;;  %v907_v17 = vld [vmem:[%s1495_s0 + $0xb2] sm:$0x8]   ;;  %v538_v21 = vsel %vm47_vm2, %v902_v15, %v533_v18  ;;  %v914_v24 = vld [vmem:[%s1495_s0 + $0xb4] ss:$-16 sm:%s610_s26]   ;;  %s589_s15 = smov 96  ;;  %s971_s26 = smov 32  }
  0x29   :  { %v903_v19 = vld [vmem:[%s1495_s0 + $0xb5] ss:$-16 sm:%s540_s21]   ;;  %v908_v26 = vld [vmem:[%s1495_s0 + $0x4] sm:$0x1]   ;;  %v568_v28 = vsel %vm77_vm1, %v907_v17, %v564_v16  ;;  %s628_s21 = smov 6  ;;  %v613_v32 = vsel %vm42_vm0, %v914_v24, %v913_v23  ;;  %s731_s16 = smov 24 }
  0x2a   :  { %v904_v22 = vld [vmem:[%s1495_s0 + $0x6e] sm:$0x80]   ;;  %520 = vrot.lane.b32.xlu1 %v519_v13, %s969_s10  ;;  %v543_v25 = vsel %vm52_vm3, %v903_v19, %v538_v21  ;;  %v909_v27 = vld [vmem:[%s1495_s0 + $0x34] ss:$-16 sm:%s579_s3]   ;;  %s638_s3 = smov 96  ;;  %s736_s17 = smov 96 }
  0x2b   :  { %v582_v29 = vsel %vm42_vm0, %v909_v27, %v908_v26  ;;  %v910_v30 = vld [vmem:[%s1495_s0 + $0x4] ss:$16 sm:%s584_s4]   ;;  %v921_v35 = vld [vmem:[%s1495_s0 + $0x83] sm:$0x1]   ;;  %v547_v36 = vsel %vm56_vm4, %v904_v22, %v543_v25  ;;  %s970_s4 = smov 40   ;;  %s972_s22 = smov 24  }
  0x2c   :  { %v911_v31 = vld [vmem:[%s1495_s0 + $0xb4] ss:$-16 sm:%s589_s15]   ;;  %499 = vrot.lane.b32.xlu0 %v498_v20, %s969_s10  ;;  %v587_v34 = vsel %vm47_vm2, %v910_v30, %v582_v29  ;;  %v916_v38 = vld [vmem:[%s1495_s0 + $0x3] sm:$0x1]   ;;  %s2_s27 = smov 3  ;;  %s4_s28 = smov 12 }
  0x2d   :  { %v915_v33 = vld [vmem:[%s1495_s0 + $0xb1] sm:$0x8]   ;;  %v922_v37 = vld [vmem:[%s1495_s0 + $0xb3] ss:$-16 sm:%s659_s20]   ;;  %v592_v39 = vsel %vm52_vm3, %v911_v31, %v587_v34  ;;  %v929_v51 = vld [vmem:[%s1495_s0 + $0x82] sm:$0x1]  }
  0x2e   :  { %569 = vrot.lane.b32.xlu1 %v568_v28, %s970_s4  ;;  %v912_v40 = vld [vmem:[%s1495_s0 + $0x6d] sm:$0x80]   ;;  %v917_v41 = vld [vmem:[%s1495_s0 + $0x33] ss:$-16 sm:%s628_s21]   ;;  %v617_v42 = vsel %vm77_vm1, %v915_v33, %v613_v32  ;;  %v662_v46 = vsel %vm42_vm0, %v922_v37, %v921_v35  ;;  %vm6_vm5 = vcmask 1043458   ;;  %s8_s5 = smov 48 }
  0x2f   :  { %v631_v43 = vsel %vm42_vm0, %v917_v41, %v916_v38  ;;  %v918_v44 = vld [vmem:[%s1495_s0 + $0x3] ss:$16 sm:%s633_s2]   ;;  %v930_v49 = vld [vmem:[%s1495_s0 + $0xb2] ss:$-16 sm:%s708_s8]   ;;  %v596_v50 = vsel %vm56_vm4, %v912_v40, %v592_v39  ;;  %vm10_vm6 = vcmask 1045508   ;;  %vm16_vm7 = vcmask 64512  }
  0x30   :  { %v919_v45 = vld [vmem:[%s1495_s0 + $0xb3] ss:$-16 sm:%s638_s3]   ;;  %548 = vrot.lane.b32.xlu0 %v547_v36, %s970_s4  ;;  %v636_v48 = vsel %vm47_vm2, %v918_v44, %v631_v43  ;;  %v924_v52 = vld [vmem:[%s1495_s0 + $0x2] sm:$0x1]   ;;  %s757_s3 = smov 6  ;;  %s726_s4 = smov 6  ;;  %v711_v63 = vsel %vm42_vm0, %v930_v49, %v929_v51 }
  0x31   :  { %v923_v47 = vld [vmem:[%s1495_s0 + $0xb0] sm:$0x8]   ;;  %v925_v53 = vld [vmem:[%s1495_s0 + $0x32] ss:$-16 sm:%s677_s13]   ;;  %v641_v54 = vsel %vm52_vm3, %v919_v45, %v636_v48  ;;  %v937_v62 = vld [vmem:[%s1495_s0 + $0x81] sm:$0x1]  }
  0x32   :  { %618 = vrot.lane.b32.xlu1 %v617_v42, %s971_s26  ;;  %v920_v55 = vld [vmem:[%s1495_s0 + $0x6c] sm:$0x80]   ;;  %v680_v56 = vsel %vm42_vm0, %v925_v53, %v924_v52  ;;  %v926_v57 = vld [vmem:[%s1495_s0 + $0x2] ss:$16 sm:%s682_s14]   ;;  %v666_v58 = vsel %vm77_vm1, %v923_v47, %v662_v46  ;;  %s25_s30 = smov 3  ;;  %s28_s8 = smov 12 }
  0x33   :  { %v931_v59 = vld [vmem:[%s1495_s0 + $0xaf] sm:$0x8]   ;;  %v685_v60 = vsel %vm47_vm2, %v926_v57, %v680_v56  ;;  %v938_v1 = vld [vmem:[%s1495_s0 + $0xb1] ss:$-16 sm:%s757_s3]   ;;  %v645_v3 = vsel %vm56_vm4, %v920_v55, %v641_v54  ;;  %s12_s13 = smov 192  ;;  %vm14_vm8 = vcmask 1047558  }
  0x34   :  { %v927_v61 = vld [vmem:[%s1495_s0 + $0xb2] ss:$-16 sm:%s687_s19]   ;;  %597 = vrot.lane.b32.xlu0 %v596_v50, %s971_s26  ;;  %v932_v2 = vld [vmem:[%s1495_s0 + $0x1] sm:$0x1]   ;;  %v715_v10 = vsel %vm77_vm1, %v931_v59, %v711_v63  ;;  %v760_v14 = vsel %vm42_vm0, %v938_v1, %v937_v62  ;;  %s973_s14 = smov 16   ;;  %vm60_vm9 = vcmask 1048512  }
  0x35   :  { %v928_v0 = vld [vmem:[%s1495_s0 + $0x6b] sm:$0x80]   ;;  %v933_v4 = vld [vmem:[%s1495_s0 + $0x31] ss:$-16 sm:%s726_s4]   ;;  %v690_v6 = vsel %vm52_vm3, %v927_v61, %v685_v60  ;;  %vm109_vm10 = vcmask 982912   ;;  %vm158_vm11 = vcmask 917312  }
  0x36   :  { %v934_v5 = vld [vmem:[%s1495_s0 + $0x1] ss:$16 sm:%s731_s16]   ;;  %667 = vrot.lane.b32.xlu1 %v666_v58, %s972_s22  ;;  %v729_v8 = vsel %vm42_vm0, %v933_v4, %v932_v2  ;;  %v694_v17 = vsel %vm56_vm4, %v928_v0, %v690_v6  ;;  %vm207_vm12 = vcmask 851712   ;;  %vm256_vm13 = vcmask 786112  }
  0x37   :  { %v939_v7 = vld [vmem:[%s1495_s0 + $0xae] sm:$0x8]   ;;  %v734_v11 = vsel %vm47_vm2, %v934_v5, %v729_v8  ;;  %v3_v12 = vld [vmem:[%s1495_s0] ss:$16 sm:%s2_s27]   ;;  %vm305_vm14 = vcmask 720512   ;;  %vm354_vm15 = vcmask 654912  }
  0x38   :  { %v935_v9 = vld [vmem:[%s1495_s0 + $0xb1] ss:$-16 sm:%s736_s17]   ;;  %v5_v13 = vld [vmem:[%s1495_s0] ss:$16 sm:%s4_s28]   ;;  %v764_v25 = vsel %vm77_vm1, %v939_v7, %v760_v14  ;;  %vm403_vm0 = vcmask 589312   ;;  %vm452_vm1 = vcmask 523712  }
  0x39   :  { %646 = vrot.lane.b32.xlu0 %v645_v3, %s972_s22  ;;  %v7_v15 = vsel %vm6_vm5, %v5_v13, %v3_v12  ;;  %v9_v16 = vld [vmem:[%s1495_s0] ss:$16 sm:%s8_s5]   ;;  %v739_v21 = vsel %vm52_vm3, %v935_v9, %v734_v11  ;;  %v936_v22 = vld [vmem:[%s1495_s0 + $0x6a] sm:$0x80]   ;;  %vm501_vm2 = vcmask 458112   ;;  %vm550_vm3 = vcmask 392512  }
  0x3a   :  { %v11_v18 = vsel %vm10_vm6, %v9_v16, %v7_v15  ;;  %v818_v19 = vld [vmem:[%s1495_s0 + $0x80] ss:$16 sm:%s25_s30]   ;;  %716 = vrot.lane.b32.xlu1 %v715_v10, %s973_s14  ;;  %v743_v27 = vsel %vm56_vm4, %v936_v22, %v739_v21  ;;  %vm599_vm4 = vcmask 326912   ;;  %vm697_vm6 = vcmask 195712  }
  0x3b   :  { %v819_v20 = vld [vmem:[%s1495_s0 + $0x80] ss:$16 sm:%s28_s8]  }
  0x3c   :  { %v31_v23 = vsel %vm6_vm5, %v819_v20, %v818_v19  ;;  %v13_v24 = vld [vmem:[%s1495_s0] ss:$16 sm:%s12_s13]   ;;  %s974_s0 = smov 8   ;;  %vm648_vm5 = vcmask 261312  }
  0x3d   :  { %34 = vst.msk [vmem:[#allocation0 + $0x20] ss:$8 sm:$0x3] %vm16_vm7, %v31_v23   ;;  %36 = vst.msk [vmem:[#allocation0 + $0x11] ss:$8 sm:$0xc] %vm16_vm7, %v31_v23   ;;  %v15_v26 = vsel %vm14_vm8, %v13_v24, %v11_v18  ;;  %695 = vrot.lane.b32.xlu0 %v694_v17, %s973_s14 }
  0x3e   :  { %17 = vst.msk [vmem:[#allocation0] ss:$8 sm:$0x3] %vm16_vm7, %v15_v26   ;;  %19 = vst.msk [vmem:[#allocation0 - $0xf] ss:$8 sm:$0xc] %vm16_vm7, %v15_v26   ;;  %765 = vrot.lane.b32.xlu1 %v764_v25, %s974_s0 }
  0x3f   :  { %21 = vst.msk [vmem:[#allocation0 - $0x10] ss:$8 sm:$0x30] %vm16_vm7, %v15_v26   ;;  %23 = vst.msk [vmem:[#allocation0 - $0x1f] ss:$8 sm:$0xc0] %vm16_vm7, %v15_v26  }
  0x40   :  { %vm746_vm7 = vcmask 130112  }
  0x41   :  { %744 = vrot.lane.b32.xlu0 %v743_v27, %s974_s0 }
  0x77   :  { %v129_v28 = vpop.permute.xlu1 %128   ;;  %v80_v29 = vpop.permute.xlu0 %79  }
  0x78   :  { %83 = vst.msk [vmem:[#allocation0 + $0x20] sm:$0x3] %vm60_vm9, %v80_v29   ;;  %85 = vst.msk [vmem:[#allocation0 + $0x26] sm:$0xc] %vm60_vm9, %v80_v29  }
  0x79   :  { %132 = vst.msk [vmem:[#allocation0 + $0x20] sm:$0x3] %vm109_vm10, %v129_v28   ;;  %134 = vst.msk [vmem:[#allocation0 + $0x26] sm:$0xc] %vm109_vm10, %v129_v28  }
  0x7c   :  { %v108_v30 = vpop.permute.xlu1 %107  }
  0x7d   :  { %v59_v31 = vpop.permute.xlu0 %58  }
  0x7e   :  { %61 = vst.msk [vmem:[#allocation0] sm:$0x3] %vm60_vm9, %v59_v31   ;;  %63 = vst.msk [vmem:[#allocation0 + $0x6] sm:$0xc] %vm60_vm9, %v59_v31  }
  0x7f   :  { %65 = vst.msk [vmem:[#allocation0 + $0xc] sm:$0x30] %vm60_vm9, %v59_v31   ;;  %67 = vst.msk [vmem:[#allocation0 + $0x12] sm:$0xc0] %vm60_vm9, %v59_v31  }
  0x80   :  { %110 = vst.msk [vmem:[#allocation0] sm:$0x3] %vm109_vm10, %v108_v30   ;;  %112 = vst.msk [vmem:[#allocation0 + $0x6] sm:$0xc] %vm109_vm10, %v108_v30   ;;  %v178_v32 = vpop.permute.xlu1 %177  }
  0x81   :  { %114 = vst.msk [vmem:[#allocation0 + $0xc] sm:$0x30] %vm109_vm10, %v108_v30   ;;  %116 = vst.msk [vmem:[#allocation0 + $0x12] sm:$0xc0] %vm109_vm10, %v108_v30  }
  0x82   :  { %181 = vst.msk [vmem:[#allocation0 + $0x20] sm:$0x3] %vm158_vm11, %v178_v32   ;;  %183 = vst.msk [vmem:[#allocation0 + $0x26] sm:$0xc] %vm158_vm11, %v178_v32   ;;  %v157_v33 = vpop.permute.xlu0 %156  }
  0x83   :  { %159 = vst.msk [vmem:[#allocation0] sm:$0x3] %vm158_vm11, %v157_v33   ;;  %161 = vst.msk [vmem:[#allocation0 + $0x6] sm:$0xc] %vm158_vm11, %v157_v33  }
  0x84   :  { %163 = vst.msk [vmem:[#allocation0 + $0xc] sm:$0x30] %vm158_vm11, %v157_v33   ;;  %165 = vst.msk [vmem:[#allocation0 + $0x12] sm:$0xc0] %vm158_vm11, %v157_v33   ;;  %v227_v34 = vpop.permute.xlu1 %226  }
  0x85   :  { %230 = vst.msk [vmem:[#allocation0 + $0x20] sm:$0x3] %vm207_vm12, %v227_v34   ;;  %232 = vst.msk [vmem:[#allocation0 + $0x26] sm:$0xc] %vm207_vm12, %v227_v34  }
  0x86   :  { %v206_v35 = vpop.permute.xlu0 %205  }
  0x87   :  { %208 = vst.msk [vmem:[#allocation0] sm:$0x3] %vm207_vm12, %v206_v35   ;;  %210 = vst.msk [vmem:[#allocation0 + $0x6] sm:$0xc] %vm207_vm12, %v206_v35  }
  0x88   :  { %212 = vst.msk [vmem:[#allocation0 + $0xc] sm:$0x30] %vm207_vm12, %v206_v35   ;;  %214 = vst.msk [vmem:[#allocation0 + $0x12] sm:$0xc0] %vm207_vm12, %v206_v35   ;;  %v276_v36 = vpop.permute.xlu1 %275  }
  0x89   :  { %279 = vst.msk [vmem:[#allocation0 + $0x20] sm:$0x3] %vm256_vm13, %v276_v36   ;;  %281 = vst.msk [vmem:[#allocation0 + $0x26] sm:$0xc] %vm256_vm13, %v276_v36  }
  0x8a   :  { %v255_v37 = vpop.permute.xlu0 %254  }
  0x8b   :  { %257 = vst.msk [vmem:[#allocation0] sm:$0x3] %vm256_vm13, %v255_v37   ;;  %259 = vst.msk [vmem:[#allocation0 + $0x6] sm:$0xc] %vm256_vm13, %v255_v37  }
  0x8c   :  { %261 = vst.msk [vmem:[#allocation0 + $0xc] sm:$0x30] %vm256_vm13, %v255_v37   ;;  %263 = vst.msk [vmem:[#allocation0 + $0x12] sm:$0xc0] %vm256_vm13, %v255_v37   ;;  %v325_v38 = vpop.permute.xlu1 %324  }
  0x8d   :  { %328 = vst.msk [vmem:[#allocation0 + $0x20] sm:$0x3] %vm305_vm14, %v325_v38   ;;  %330 = vst.msk [vmem:[#allocation0 + $0x26] sm:$0xc] %vm305_vm14, %v325_v38  }
  0x8e   :  { %v304_v39 = vpop.permute.xlu0 %303  }
  0x8f   :  { %306 = vst.msk [vmem:[#allocation0] sm:$0x3] %vm305_vm14, %v304_v39   ;;  %308 = vst.msk [vmem:[#allocation0 + $0x6] sm:$0xc] %vm305_vm14, %v304_v39  }
  0x90   :  { %310 = vst.msk [vmem:[#allocation0 + $0xc] sm:$0x30] %vm305_vm14, %v304_v39   ;;  %312 = vst.msk [vmem:[#allocation0 + $0x12] sm:$0xc0] %vm305_vm14, %v304_v39   ;;  %v374_v40 = vpop.permute.xlu1 %373  }
  0x91   :  { %377 = vst.msk [vmem:[#allocation0 + $0x20] sm:$0x3] %vm354_vm15, %v374_v40   ;;  %379 = vst.msk [vmem:[#allocation0 + $0x26] sm:$0xc] %vm354_vm15, %v374_v40  }
  0x92   :  { %v353_v41 = vpop.permute.xlu0 %352  }
  0x93   :  { %355 = vst.msk [vmem:[#allocation0] sm:$0x3] %vm354_vm15, %v353_v41   ;;  %357 = vst.msk [vmem:[#allocation0 + $0x6] sm:$0xc] %vm354_vm15, %v353_v41  }
  0x94   :  { %359 = vst.msk [vmem:[#allocation0 + $0xc] sm:$0x30] %vm354_vm15, %v353_v41   ;;  %361 = vst.msk [vmem:[#allocation0 + $0x12] sm:$0xc0] %vm354_vm15, %v353_v41   ;;  %v423_v42 = vpop.permute.xlu1 %422  }
  0x95   :  { %426 = vst.msk [vmem:[#allocation0 + $0x20] sm:$0x3] %vm403_vm0, %v423_v42   ;;  %428 = vst.msk [vmem:[#allocation0 + $0x26] sm:$0xc] %vm403_vm0, %v423_v42  }
  0x96   :  { %v402_v43 = vpop.permute.xlu0 %401  }
  0x97   :  { %404 = vst.msk [vmem:[#allocation0] sm:$0x3] %vm403_vm0, %v402_v43   ;;  %406 = vst.msk [vmem:[#allocation0 + $0x6] sm:$0xc] %vm403_vm0, %v402_v43  }
  0x98   :  { %408 = vst.msk [vmem:[#allocation0 + $0xc] sm:$0x30] %vm403_vm0, %v402_v43   ;;  %410 = vst.msk [vmem:[#allocation0 + $0x12] sm:$0xc0] %vm403_vm0, %v402_v43   ;;  %v472_v44 = vpop.permute.xlu1 %471  }
  0x99   :  { %475 = vst.msk [vmem:[#allocation0 + $0x20] sm:$0x3] %vm452_vm1, %v472_v44   ;;  %477 = vst.msk [vmem:[#allocation0 + $0x26] sm:$0xc] %vm452_vm1, %v472_v44  }
  0x9a   :  { %v451_v45 = vpop.permute.xlu0 %450  }
  0x9b   :  { %453 = vst.msk [vmem:[#allocation0] sm:$0x3] %vm452_vm1, %v451_v45   ;;  %455 = vst.msk [vmem:[#allocation0 + $0x6] sm:$0xc] %vm452_vm1, %v451_v45  }
  0x9c   :  { %457 = vst.msk [vmem:[#allocation0 + $0xc] sm:$0x30] %vm452_vm1, %v451_v45   ;;  %459 = vst.msk [vmem:[#allocation0 + $0x12] sm:$0xc0] %vm452_vm1, %v451_v45   ;;  %v521_v46 = vpop.permute.xlu1 %520  }
  0x9d   :  { %524 = vst.msk [vmem:[#allocation0 + $0x20] sm:$0x3] %vm501_vm2, %v521_v46   ;;  %526 = vst.msk [vmem:[#allocation0 + $0x26] sm:$0xc] %vm501_vm2, %v521_v46  }
  0x9e   :  { %v500_v47 = vpop.permute.xlu0 %499  }
  0x9f   :  { %502 = vst.msk [vmem:[#allocation0] sm:$0x3] %vm501_vm2, %v500_v47   ;;  %504 = vst.msk [vmem:[#allocation0 + $0x6] sm:$0xc] %vm501_vm2, %v500_v47  }
  0xa0   :  { %506 = vst.msk [vmem:[#allocation0 + $0xc] sm:$0x30] %vm501_vm2, %v500_v47   ;;  %508 = vst.msk [vmem:[#allocation0 + $0x12] sm:$0xc0] %vm501_vm2, %v500_v47   ;;  %v570_v48 = vpop.permute.xlu1 %569  }
  0xa1   :  { %573 = vst.msk [vmem:[#allocation0 + $0x20] sm:$0x3] %vm550_vm3, %v570_v48   ;;  %575 = vst.msk [vmem:[#allocation0 + $0x26] sm:$0xc] %vm550_vm3, %v570_v48  }
  0xa2   :  { %v549_v49 = vpop.permute.xlu0 %548  }
  0xa3   :  { %551 = vst.msk [vmem:[#allocation0] sm:$0x3] %vm550_vm3, %v549_v49   ;;  %553 = vst.msk [vmem:[#allocation0 + $0x6] sm:$0xc] %vm550_vm3, %v549_v49  }
  0xa4   :  { %555 = vst.msk [vmem:[#allocation0 + $0xc] sm:$0x30] %vm550_vm3, %v549_v49   ;;  %557 = vst.msk [vmem:[#allocation0 + $0x12] sm:$0xc0] %vm550_vm3, %v549_v49   ;;  %v619_v50 = vpop.permute.xlu1 %618  }
  0xa5   :  { %622 = vst.msk [vmem:[#allocation0 + $0x20] sm:$0x3] %vm599_vm4, %v619_v50   ;;  %624 = vst.msk [vmem:[#allocation0 + $0x26] sm:$0xc] %vm599_vm4, %v619_v50  }
  0xa6   :  { %v598_v51 = vpop.permute.xlu0 %597  }
  0xa7   :  { %600 = vst.msk [vmem:[#allocation0] sm:$0x3] %vm599_vm4, %v598_v51   ;;  %602 = vst.msk [vmem:[#allocation0 + $0x6] sm:$0xc] %vm599_vm4, %v598_v51  }
  0xa8   :  { %604 = vst.msk [vmem:[#allocation0 + $0xc] sm:$0x30] %vm599_vm4, %v598_v51   ;;  %606 = vst.msk [vmem:[#allocation0 + $0x12] sm:$0xc0] %vm599_vm4, %v598_v51   ;;  %v668_v52 = vpop.permute.xlu1 %667  }
  0xa9   :  { %671 = vst.msk [vmem:[#allocation0 + $0x20] sm:$0x3] %vm648_vm5, %v668_v52   ;;  %673 = vst.msk [vmem:[#allocation0 + $0x26] sm:$0xc] %vm648_vm5, %v668_v52  }
  0xab   :  { %v647_v53 = vpop.permute.xlu0 %646  }
  0xac   :  { %649 = vst.msk [vmem:[#allocation0] sm:$0x3] %vm648_vm5, %v647_v53   ;;  %651 = vst.msk [vmem:[#allocation0 + $0x6] sm:$0xc] %vm648_vm5, %v647_v53   ;;  %v717_v54 = vpop.permute.xlu1 %716  }
  0xad   :  { %653 = vst.msk [vmem:[#allocation0 + $0xc] sm:$0x30] %vm648_vm5, %v647_v53   ;;  %655 = vst.msk [vmem:[#allocation0 + $0x12] sm:$0xc0] %vm648_vm5, %v647_v53  }
  0xae   :  { %720 = vst.msk [vmem:[#allocation0 + $0x20] sm:$0x3] %vm697_vm6, %v717_v54   ;;  %722 = vst.msk [vmem:[#allocation0 + $0x26] sm:$0xc] %vm697_vm6, %v717_v54  }
  0xaf   :  { %v696_v55 = vpop.permute.xlu0 %695  }
  0xb0   :  { %698 = vst.msk [vmem:[#allocation0] sm:$0x3] %vm697_vm6, %v696_v55   ;;  %700 = vst.msk [vmem:[#allocation0 + $0x6] sm:$0xc] %vm697_vm6, %v696_v55   ;;  %v766_v56 = vpop.permute.xlu1 %765  }
  0xb1   :  { %702 = vst.msk [vmem:[#allocation0 + $0xc] sm:$0x30] %vm697_vm6, %v696_v55   ;;  %704 = vst.msk [vmem:[#allocation0 + $0x12] sm:$0xc0] %vm697_vm6, %v696_v55  }
  0xb2   :  { %769 = vst.msk [vmem:[#allocation0 + $0x20] sm:$0x3] %vm746_vm7, %v766_v56   ;;  %771 = vst.msk [vmem:[#allocation0 + $0x26] sm:$0xc] %vm746_vm7, %v766_v56  }
  0xb3   :  { %v745_v57 = vpop.permute.xlu0 %744  }
  0xb4   :  { %747 = vst.msk [vmem:[#allocation0] sm:$0x3] %vm746_vm7, %v745_v57   ;;  %749 = vst.msk [vmem:[#allocation0 + $0x6] sm:$0xc] %vm746_vm7, %v745_v57  }
  0xb5   :  { %751 = vst.msk [vmem:[#allocation0 + $0xc] sm:$0x30] %vm746_vm7, %v745_v57   ;;  %753 = vst.msk [vmem:[#allocation0 + $0x12] sm:$0xc0] %vm746_vm7, %v745_v57  }
  0xb9   :  { %v801_v58 = vld [vmem:[#allocation0 + $0x20] sm:$0x3]  ;;  %v808_v59 = vld [vmem:[#allocation0 + $0x28] sm:$0x3] }
  0xba   :  { %943 = vst [vmem:[%s1496_s1 + $0x8] sm:$0x3] %v801_v58  ;;  %944 = vst [vmem:[%s1496_s1 + $0xa] sm:$0x3] %v808_v59 }
  0xbb   :  { %v776_v60 = vld [vmem:[#allocation0] sm:$0x3]  ;;  %v781_v61 = vld [vmem:[#allocation0 + $0x8] sm:$0x3] }
  0xbc   :  { %v787_v62 = vld [vmem:[#allocation0 + $0x10] sm:$0x3]  ;;  %779 = vst [vmem:[%s1496_s1] sm:$0x3] %v776_v60  ;;  %940 = vst [vmem:[%s1496_s1 + $0x2] sm:$0x3] %v781_v61 }
  0xbd   :  { %941 = vst [vmem:[%s1496_s1 + $0x4] sm:$0x3] %v787_v62  ;;  %v794_v63 = vld [vmem:[#allocation0 + $0x18] sm:$0x3] }
  0xbe   :  { %942 = vst [vmem:[%s1496_s1 + $0x6] sm:$0x3] %v794_v63 }

// kernel: _lambda_.2
= control target key start
LH: loop header
LB: loop body
LE: loop exit
PB: predicated region body
PF: predicated region fallthrough
CT: control target
= control target key end

     0   :  { %s1318_s30 = smov 0   ;;  %s1320_s10 = smov 0   ;;  %s1528_s0 = inlined_call_operand.vmem [shape: f32[2,1024,8], index: 0, kind: input, shape index: {}]   ;;  %s1529_s1 = inlined_call_operand.vmem [shape: f32[2,1024,8], index: 1, kind: input, shape index: {}]   ;;  %s1530_s2 = inlined_call_operand.vmem [shape: f32[2,1024,8], index: 2, kind: input, shape index: {}]   ;;  %s1531_s3 = inlined_call_operand.vmem [shape: f32[3,8,6], index: 3, kind: input, shape index: {}]   ;;  %s1532_s4 = inlined_call_operand.vmem [shape: f32[1,6], index: 4, kind: input, shape index: {}]   ;;  %s1533_s5 = inlined_call_operand.vmem [shape: f32[6,6], index: 5, kind: input, shape index: {}]   ;;  %s1534_s6 = inlined_call_operand.vmem [shape: f32[1,6], index: 6, kind: input, shape index: {}]   ;;  %s1535_s7 = inlined_call_operand.vmem [shape: f32[6,24], index: 7, kind: input, shape index: {}]   ;;  %s1536_s8 = inlined_call_operand.vmem [shape: f32[1,24], index: 8, kind: input, shape index: {}]   ;;  %s1537_s9 = inlined_call_operand.vmem [shape: f32[2,1,24], index: 9, kind: output, shape index: {}]  }
   0x1   :  { %s1322_s11 = smov 0   ;;  %s1324_s12 = smov 0  }
   0x2   :  { %s1326_s13 = smov 0  }
   0x3 LB: > { %s28_s14 = sadd.s32 1, %s1255_s11  ;;  %s31_s15 = sadd.s32 1, %s1259_s12  ;;  %s1263_s13 = sphi %s1326_s13, %s19_s13   ;;  %s1259_s12 = sphi %s1324_s12, %s1545_s12   ;;  %s1255_s11 = sphi %s1322_s11, %s1544_s11   ;;  %s1251_s10 = sphi %s1320_s10, %s1543_s10   ;;  %s1247_s30 = sphi %s1318_s30, %s1542_s30  }
   0x4   : > { %p29_p0 = scmp.ge.s32.totalorder %s28_s14, 8  ;;  %p1120_p1 = scmp.ge.s32.totalorder %s1263_s13, 1 }
   0x5   : > { %p340_p2 = scmp.lt.s32.totalorder %s1263_s13, 17 }
   0x6   : > { %s1547_s14 = smov (%p29_p0, %s28_s14), 0  ;;  %s1549_s15 = smov (!%p29_p0, %s31_s15), %s1259_s12 }
   0x7   : > { %1538 = sst [smem:[#allocation5_spill]] %s1547_s14  ;;  %p341_p3 = pnand %p1120_p1, %p340_p2 }
   0x8   : > { %p33_p4 = scmp.ge.s32.totalorder %s1549_s15, 2  ;;  %s1121_s16 = sshll.u32 (!%p341_p3), %s1247_s30, 4 }
   0x9   : > { %344 = sbr.rel (%p341_p3) target bundleno = 717 (0x2cd), region = 56  ;;  %p397_p5 = scmp.lt.s32.totalorder (!%p341_p3), %s1251_s10, 1 }
   0xa   : > { %s1551_s15 = smov (%p33_p4, %s1549_s15), 0  ;;  %p399_p6 = scmp.lt.s32.totalorder (!%p341_p3), %s1121_s16, 127 }
   0xb   : > { %1539 = sst [smem:[#allocation6_spill]] %s1551_s15  ;;  %p1130_p7 = scmp.ne.s32.totalorder (!%p341_p3), %s1247_s30, 0 }
   0xe   : > { %s1553_s10 = smov (!%p397_p5, %s1251_s10), 1  ;;  %s1555_s16 = smov (!%p399_p6, %s1121_s16), 127 }
   0xf   : > { %s1122_s17 = sshll.u32 %s1553_s10, 7  ;;  %s428_s20 = scalar_lea.vmem %s1537_s9, %s1553_s10 }
  0x10   : > { %s402_s21 = sadd.s32 %s1122_s17, %s1555_s16  ;;  %432 = sbr.rel (%p1130_p7) target bundleno = 24 (0x18), region = 60 }
  0x11   : > { %s1123_s22 = sshll.u32 %s402_s21, 3 }
  0x12   : > { %s1361_s25 = scalar_lea.vmem %s1528_s0, %s1123_s22  ;;  %s1366_s28 = scalar_lea.vmem %s1529_s1, %s1123_s22 }
  0x13   : > { %s1371_s14 = scalar_lea.vmem %s1530_s2, %s1123_s22 }
  0x15   : > { %vm433_vm0 = vcmask 57344   ;;  %v1265_v0 = vmov 0.0  }
  0x16   : > { %434 = vst.msk [vmem:[#allocation2] sm:$0x1] %vm433_vm0, %v1265_v0  ;;  %435 = vst.msk [vmem:[#allocation3] sm:$0x1] %vm433_vm0, %v1265_v0 }
  0x17   : > { %436 = vst.msk [vmem:[#allocation4] sm:$0x1] %vm433_vm0, %v1265_v0 }
  0x18 PF: > { %v438_v1 = vld [vmem:[%s1361_s25] sm:$0xff]  ;;  %v439_v2 = vld [vmem:[%s1361_s25 + $0x8] sm:$0xff]  ;;  %vm454_vm1 = vcmask 64512   ;;  %v440_v3 = vld [vmem:[%s1361_s25 + $0x10] sm:$0xff]  ;;  %vm493_vm2 = vcmask 57344   ;;  %p1131_p8 = scmp.ne.s32.totalorder %s1247_s30, 7 }
  0x19   : > { %v441_v4 = vld [vmem:[%s1361_s25 + $0x18] sm:$0xff]  ;;  %v455_v5 = vsel %vm454_vm1, %v438_v1, 0.0  ;;  %v456_v6 = vsel %vm454_vm1, %v439_v2, 0.0  ;;  %v442_v7 = vld [vmem:[%s1361_s25 + $0x20] sm:$0xff]  ;;  %v458_v9 = vsel %vm454_vm1, %v440_v3, 0.0  ;;  %v443_v11 = vld [vmem:[%s1361_s25 + $0x28] sm:$0xff] }
  0x1a   : > { %v457_v8 = vadd.f32 %v456_v6, %v455_v5  ;;  %v460_v10 = vsel %vm454_vm1, %v441_v4, 0.0  ;;  %v462_v13 = vsel %vm454_vm1, %v442_v7, 0.0  ;;  %v496_v14 = vld [vmem:[%s1366_s28] sm:$0xff]  ;;  %v444_v15 = vld [vmem:[%s1361_s25 + $0x30] sm:$0xff]  ;;  %v497_v17 = vld [vmem:[%s1366_s28 + $0x8] sm:$0xff]  ;;  %v464_v19 = vsel %vm454_vm1, %v443_v11, 0.0 }
  0x1b   : > { %v498_v18 = vld [vmem:[%s1366_s28 + $0x10] sm:$0xff]  ;;  %v499_v20 = vld [vmem:[%s1366_s28 + $0x18] sm:$0xff]  ;;  %v512_v21 = vsel %vm454_vm1, %v496_v14, 0.0  ;;  %v513_v22 = vsel %vm454_vm1, %v497_v17, 0.0  ;;  %v500_v26 = vld [vmem:[%s1366_s28 + $0x20] sm:$0xff]  ;;  %v466_v29 = vsel %vm454_vm1, %v444_v15, 0.0 }
  0x1c   : > { %v459_v12 = vadd.f32 %v458_v9, %v457_v8  ;;  %v515_v23 = vsel %vm454_vm1, %v498_v18, 0.0  ;;  %v445_v24 = vld [vmem:[%s1361_s25 + $0x38] sm:$0xff]  ;;  %v514_v27 = vadd.f32 %v513_v22, %v512_v21  ;;  %v446_v28 = vld [vmem:[%s1361_s25 + $0x40] sm:$0xff]  ;;  %v517_v30 = vsel %vm454_vm1, %v499_v20, 0.0  ;;  %v501_v32 = vld [vmem:[%s1366_s28 + $0x28] sm:$0xff] }
  0x1d   : > { %v447_v34 = vld [vmem:[%s1361_s25 + $0x48] sm:$0xff]  ;;  %v468_v35 = vsel %vm454_vm1, %v445_v24, 0.0  ;;  %v519_v36 = vsel %vm454_vm1, %v500_v26, 0.0  ;;  %v552_v37 = vld [vmem:[%s1371_s14] sm:$0xff]  ;;  %v470_v39 = vsel %vm454_vm1, %v446_v28, 0.0  ;;  %v502_v40 = vld [vmem:[%s1366_s28 + $0x30] sm:$0xff] }
  0x1e   : > { %v461_v16 = vadd.f32 %v460_v10, %v459_v12  ;;  %v516_v33 = vadd.f32 %v515_v23, %v514_v27  ;;  %v553_v42 = vld [vmem:[%s1371_s14 + $0x8] sm:$0xff]  ;;  %v554_v43 = vld [vmem:[%s1371_s14 + $0x10] sm:$0xff]  ;;  %v521_v44 = vsel %vm454_vm1, %v501_v32, 0.0  ;;  %v555_v45 = vld [vmem:[%s1371_s14 + $0x18] sm:$0xff]  ;;  %v568_v46 = vsel %vm454_vm1, %v552_v37, 0.0 }
  0x1f   : > { %v569_v47 = vsel %vm454_vm1, %v553_v42, 0.0  ;;  %v571_v48 = vsel %vm454_vm1, %v554_v43, 0.0  ;;  %v448_v49 = vld [vmem:[%s1361_s25 + $0x50] sm:$0xff]  ;;  %v503_v51 = vld [vmem:[%s1366_s28 + $0x38] sm:$0xff]  ;;  %v556_v53 = vld [vmem:[%s1371_s14 + $0x20] sm:$0xff]  ;;  %v472_v55 = vsel %vm454_vm1, %v447_v34, 0.0 }
  0x20   : > { %v463_v25 = vadd.f32 %v462_v13, %v461_v16  ;;  %v518_v41 = vadd.f32 %v517_v30, %v516_v33  ;;  %v570_v54 = vadd.f32 %v569_v47, %v568_v46  ;;  %v523_v56 = vsel %vm454_vm1, %v502_v40, 0.0  ;;  %v449_v58 = vld [vmem:[%s1361_s25 + $0x58] sm:$0xff]  ;;  %v504_v60 = vld [vmem:[%s1366_s28 + $0x40] sm:$0xff]  ;;  %v557_v62 = vld [vmem:[%s1371_s14 + $0x28] sm:$0xff] }
  0x21   : > { %v573_v57 = vsel %vm454_vm1, %v555_v45, 0.0  ;;  %v474_v0 = vsel %vm454_vm1, %v448_v49, 0.0  ;;  %v525_v1 = vsel %vm454_vm1, %v503_v51, 0.0  ;;  %v575_v2 = vsel %vm454_vm1, %v556_v53, 0.0  ;;  %v450_v3 = vld [vmem:[%s1361_s25 + $0x60] sm:$0xff]  ;;  %v505_v5 = vld [vmem:[%s1366_s28 + $0x48] sm:$0xff] }
  0x22   : > { %v465_v31 = vadd.f32 %v464_v19, %v463_v25  ;;  %v520_v52 = vadd.f32 %v519_v36, %v518_v41  ;;  %v572_v63 = vadd.f32 %v571_v48, %v570_v54  ;;  %v558_v7 = vld [vmem:[%s1371_s14 + $0x30] sm:$0xff]  ;;  %v476_v9 = vsel %vm454_vm1, %v449_v58, 0.0  ;;  %v451_v12 = vld [vmem:[%s1361_s25 + $0x68] sm:$0xff]  ;;  %v559_v16 = vld [vmem:[%s1371_s14 + $0x38] sm:$0xff] }
  0x23   : > { %v527_v10 = vsel %vm454_vm1, %v504_v60, 0.0  ;;  %v577_v11 = vsel %vm454_vm1, %v557_v62, 0.0  ;;  %v506_v14 = vld [vmem:[%s1366_s28 + $0x50] sm:$0xff]  ;;  %v478_v18 = vsel %vm454_vm1, %v450_v3, 0.0  ;;  %v529_v19 = vsel %vm454_vm1, %v505_v5, 0.0  ;;  %v507_v23 = vld [vmem:[%s1366_s28 + $0x58] sm:$0xff] }
  0x24   : > { %v467_v38 = vadd.f32 %v466_v29, %v465_v31  ;;  %v522_v61 = vadd.f32 %v521_v44, %v520_v52  ;;  %v574_v8 = vadd.f32 %v573_v57, %v572_v63  ;;  %v579_v20 = vsel %vm454_vm1, %v558_v7, 0.0  ;;  %v452_v21 = vld [vmem:[%s1361_s25 + $0x70] sm:$0xff]  ;;  %v560_v25 = vld [vmem:[%s1371_s14 + $0x40] sm:$0xff]  ;;  %v453_v30 = vld [vmem:[%s1361_s25 + $0x78] sm:$0xff] }
  0x25   : > { %v480_v27 = vsel %vm454_vm1, %v451_v12, 0.0  ;;  %v531_v28 = vsel %vm454_vm1, %v506_v14, 0.0  ;;  %v581_v29 = vsel %vm454_vm1, %v559_v16, 0.0  ;;  %v508_v32 = vld [vmem:[%s1366_s28 + $0x60] sm:$0xff]  ;;  %v561_v34 = vld [vmem:[%s1371_s14 + $0x48] sm:$0xff]  ;;  %v482_v36 = vsel %vm454_vm1, %v452_v21, 0.0 }
  0x26   : > { %v469_v50 = vadd.f32 %v468_v35, %v467_v38  ;;  %v524_v6 = vadd.f32 %v523_v56, %v522_v61  ;;  %v576_v17 = vadd.f32 %v575_v2, %v574_v8  ;;  %v533_v37 = vsel %vm454_vm1, %v507_v23, 0.0  ;;  %v509_v40 = vld [vmem:[%s1366_s28 + $0x68] sm:$0xff]  ;;  %v562_v42 = vld [vmem:[%s1371_s14 + $0x50] sm:$0xff]  ;;  %v564_v57 = vld [vmem:[%s1371_s14 + $0x60] sm:$0xff] }
  0x27   : > { %v583_v38 = vsel %vm454_vm1, %v560_v25, 0.0  ;;  %v484_v44 = vsel %vm454_vm1, %v453_v30, 0.0  ;;  %v535_v45 = vsel %vm454_vm1, %v508_v32, 0.0  ;;  %v585_v46 = vsel %vm454_vm1, %v561_v34, 0.0  ;;  %v510_v48 = vld [vmem:[%s1366_s28 + $0x70] sm:$0xff]  ;;  %v565_v63 = vld [vmem:[%s1371_s14 + $0x68] sm:$0xff] }
  0x28   : > { %v471_v59 = vadd.f32 %v470_v39, %v469_v50  ;;  %v526_v15 = vadd.f32 %v525_v1, %v524_v6  ;;  %v578_v26 = vadd.f32 %v577_v11, %v576_v17  ;;  %v563_v50 = vld [vmem:[%s1371_s14 + $0x58] sm:$0xff]  ;;  %v537_v52 = vsel %vm454_vm1, %v509_v40, 0.0  ;;  %v566_v5 = vld [vmem:[%s1371_s14 + $0x70] sm:$0xff] }
  0x29   : > { %v587_v53 = vsel %vm454_vm1, %v562_v42, 0.0  ;;  %v589_v60 = vsel %vm454_vm1, %v563_v50, 0.0  ;;  %v591_v2 = vsel %vm454_vm1, %v564_v57, 0.0  ;;  %v593_v7 = vsel %vm454_vm1, %v565_v63, 0.0 }
  0x2a   : > { %v473_v4 = vadd.f32 %v472_v55, %v471_v59  ;;  %v528_v24 = vadd.f32 %v527_v10, %v526_v15  ;;  %v580_v35 = vadd.f32 %v579_v20, %v578_v26  ;;  %v511_v55 = vld [vmem:[%s1366_s28 + $0x78] sm:$0xff]  ;;  %v539_v59 = vsel %vm454_vm1, %v510_v48, 0.0  ;;  %v437_v20 = vld [vmem:[#allocation2] sm:$0x1] }
  0x2b   : > { %v541_v1 = vsel %vm454_vm1, %v511_v55, 0.0  ;;  %v567_v10 = vld [vmem:[%s1371_s14 + $0x78] sm:$0xff]  ;;  %v595_v12 = vsel %vm454_vm1, %v566_v5, 0.0 }
  0x2c   : > { %v475_v13 = vadd.f32 %v474_v0, %v473_v4  ;;  %v530_v33 = vadd.f32 %v529_v19, %v528_v24  ;;  %v582_v43 = vadd.f32 %v581_v29, %v580_v35  ;;  %v597_v16 = vsel %vm454_vm1, %v567_v10, 0.0  ;;  %v495_v29 = vld [vmem:[#allocation3] sm:$0x1]  ;;  %v551_v35 = vld [vmem:[#allocation4] sm:$0x1] }
  0x2e   : > { %v477_v22 = vadd.f32 %v476_v9, %v475_v13  ;;  %v532_v41 = vadd.f32 %v531_v28, %v530_v33  ;;  %v584_v51 = vadd.f32 %v583_v38, %v582_v43 }
  0x30   : > { %v479_v31 = vadd.f32 %v478_v18, %v477_v22  ;;  %v534_v49 = vadd.f32 %v533_v37, %v532_v41  ;;  %v586_v58 = vadd.f32 %v585_v46, %v584_v51 }
  0x32   : > { %v481_v39 = vadd.f32 %v480_v27, %v479_v31  ;;  %v536_v56 = vadd.f32 %v535_v45, %v534_v49  ;;  %v588_v0 = vadd.f32 %v587_v53, %v586_v58 }
  0x34   : > { %v483_v47 = vadd.f32 %v482_v36, %v481_v39  ;;  %v538_v62 = vadd.f32 %v537_v52, %v536_v56  ;;  %v590_v6 = vadd.f32 %v589_v60, %v588_v0 }
  0x36   : > { %v485_v54 = vadd.f32 %v484_v44, %v483_v47  ;;  %v540_v4 = vadd.f32 %v539_v59, %v538_v62  ;;  %v592_v11 = vadd.f32 %v591_v2, %v590_v6 }
  0x38   : > { %v486_v61 = vrot.slane %v485_v54, 4  ;;  %v542_v9 = vadd.f32 %v541_v1, %v540_v4  ;;  %v594_v15 = vadd.f32 %v593_v7, %v592_v11 }
  0x3a   : > { %v487_v3 = vadd.f32 %v486_v61, %v485_v54  ;;  %v543_v14 = vrot.slane %v542_v9, 4  ;;  %v596_v19 = vadd.f32 %v595_v12, %v594_v15 }
  0x3c   : > { %v488_v8 = vrot.slane %v487_v3, 2  ;;  %v544_v18 = vadd.f32 %v543_v14, %v542_v9  ;;  %v598_v23 = vadd.f32 %v597_v16, %v596_v19 }
  0x3e   : > { %v489_v13 = vadd.f32 %v488_v8, %v487_v3  ;;  %v545_v22 = vrot.slane %v544_v18, 2  ;;  %v599_v26 = vrot.slane %v598_v23, 4 }
  0x40   : > { %v490_v17 = vrot.slane %v489_v13, 1  ;;  %v546_v25 = vadd.f32 %v545_v22, %v544_v18  ;;  %v600_v28 = vadd.f32 %v599_v26, %v598_v23 }
  0x42   : > { %v491_v21 = vadd.f32 %v490_v17, %v489_v13  ;;  %v547_v27 = vrot.slane %v546_v25, 1  ;;  %v601_v31 = vrot.slane %v600_v28, 2 }
  0x44   : > { %v492_v24 = vadd.f32 %v491_v21, %v437_v20  ;;  %v548_v30 = vadd.f32 %v547_v27, %v546_v25  ;;  %v602_v33 = vadd.f32 %v601_v31, %v600_v28 }
  0x46   : > { %494 = vst.msk [vmem:[#allocation2] sm:$0x1] %vm493_vm2, %v492_v24  ;;  %v549_v32 = vadd.f32 %v548_v30, %v495_v29  ;;  %v603_v34 = vrot.slane %v602_v33, 1 }
  0x48   : > { %550 = vst.msk [vmem:[#allocation3] sm:$0x1] %vm493_vm2, %v549_v32  ;;  %v604_v36 = vadd.f32 %v603_v34, %v602_v33  ;;  %610 = sbr.rel (%p1131_p8) target bundleno = 717 (0x2cd), region = 64 }
  0x4a   : > { %v605_v37 = vadd.f32 %v604_v36, %v551_v35 }
  0x4c   : > { %606 = vst.msk [vmem:[#allocation4] sm:$0x1] %vm493_vm2, %v605_v37 }
  0x4d   : > { %v1132_v38 = vld [vmem:[%s1531_s3 + $0x8] sm:$0xff]  ;;  %v617_v40 = vld [vmem:[%s1531_s3] sm:$0xff]  ;;  %v1266_v41 = vmov 0.0   ;;  %vm1267_vm3 = vmmov 0   ;;  %v1135_v46 = vld [vmem:[%s1531_s3 + $0x10] sm:$0xff]  ;;  %vm851_vm4 = vcmask 1045504  }
  0x4e   : > { %1153 = vmatprep.subr.mxu0 %v1266_v41  ;;  %1155 = vmatprep.mubr.msk.f32.mxu0 %vm1267_vm3, %v1266_v41  ;;  %v611_v43 = vld [vmem:[#allocation2] sm:$0x1]  ;;  %vm847_vm5 = vcmask 48128   ;;  %vm1014_vm6 = vcmask 188416  }
  0x4f   : > { %v613_v39 = vld [vmem:[#allocation3] sm:$0x1]  ;;  %1154 = vmatpush3.msra.mxu0 %v1132_v38  ;;  %1158 = vmatprep.subr.mxu1 %v1266_v41  ;;  %v612_v45 = vmul.f32 0.0009765625, %v611_v43  ;;  %v842_v55 = vld [vmem:[%s1532_s4] sm:$0x1] }
  0x50   : > { %v614_v42 = vmul.f32 0.0009765625, %v613_v39  ;;  %1159 = vmatpush3.msra.mxu1 %v617_v40  ;;  %1160 = vmatprep.mubr.msk.f32.mxu1 %vm1267_vm3, %v1266_v41  ;;  %v845_v48 = vld [vmem:[%s1533_s5] sm:$0x3f] }
  0x51   : > { %1163 = vmatprep.subr.mxu0 %v1266_v41  ;;  %1161 = vmatmul.mubr.msk.f32.vlgmr.msra.gmra.mxu1 %vm454_vm1, %v612_v45  ;;  %v926_v60 = vld [vmem:[%s1535_s7] sm:$0x3f] }
  0x52   : > { %1156 = vmatmul.mubr.msk.f32.vlgmr.msra.gmra.mxu0 %vm454_vm1, %v614_v42  ;;  %1168 = vmatprep.subr.mxu1 %v1266_v41  ;;  %v846_v61 = vld [vmem:[%s1534_s6] sm:$0x1] }
  0x53   : > { %v615_v44 = vld [vmem:[#allocation4] sm:$0x1]  ;;  %1164 = vmatpush3.msra.mxu0 %v1135_v46  ;;  %1165 = vmatprep.mubr.msk.f32.mxu0 %vm1267_vm3, %v1266_v41  ;;  %v927_v2 = vld [vmem:[%s1536_s8] sm:$0x1] }
  0x54   : > { %v616_v47 = vmul.f32 0.0009765625, %v615_v44  ;;  %1170 = vmatprep.mubr.msk.f32.mxu1 %vm1267_vm3, %v1266_v41  ;;  %1173 = vmatprep.subr.mxu0 %v1266_v41 }
  0x55   : > { %1169 = vmatpush3.msk.msra.mxu1 %vm851_vm4, %v845_v48 }
  0x56   : > { %1166 = vmatmul.mubr.msk.f32.vlgmr.msra.gmra.mxu0 %vm454_vm1, %v616_v47 }
  0x57   : > { %1175 = vmatprep.mubr.msk.f32.mxu0 %vm1267_vm3, %v1266_v41  ;;  %1174 = vmatpush3.msk.msra.mxu0 %vm851_vm4, %v926_v60 }
 0x111   : > { %v762_v50 = vpop.f32.mrf.mxu1 }
 0x112   : > { %v689_v49 = vpop.f32.mrf.mxu0 }
 0x113   : > { %v763_v52 = vadd.f32 %v762_v50, %v689_v49  ;;  %v1162_v53 = vpop.f32.mrf.mxu1 }
 0x114   : > { %v1157_v51 = vpop.f32.mrf.mxu0 }
 0x116   : > { %v837_v54 = vpop.f32.mrf.mxu0 }
 0x117   : > { %v841_v56 = vadd.f32 %v837_v54, %v763_v52 }
 0x118   : > { %v1167_v57 = vpop.f32.mrf.mxu0 }
 0x119   : > { %v843_v58 = vadd.f32 %v842_v55, %v841_v56 }
 0x11b   : > { %v844_v59 = vmax.f32 %v843_v58, 0.0 }
 0x11d   : > { %1171 = vmatmul.mubr.msk.f32.vlgmr.msra.gmra.mxu1 %vm847_vm5, %v844_v59 }
 0x1dd   : > { %v921_v62 = vpop.f32.mrf.mxu1 }
 0x1de   : > { %v922_v63 = vadd.f32 %v921_v62, %v846_v61 }
 0x1df   : > { %v1172_v0 = vpop.f32.mrf.mxu1 }
 0x1e0   : > { %v925_v1 = vmax.f32 %v922_v63, 0.0 }
 0x1e2   : > { %1176 = vmatmul.mubr.msk.f32.vlgmr.msra.gmra.mxu0 %vm847_vm5, %v925_v1 }
 0x2a2   : > { %v1000_v3 = vpop.f32.mrf.mxu0 }
 0x2a3   : > { %v1001_v4 = vadd.f32 %v1000_v3, %v927_v2 }
 0x2a4   : > { %v1177_v5 = vpop.f32.mrf.mxu0 }
 0x2a5   : > { %v1004_v6 = vand.u32 2147483647, %v1001_v4  ;;  %vm1008_vm7 = vcmp.ge.f32.partialorder %v1001_v4, 0.0 }
 0x2a7   : > { %v1005_v7 = vsub.f32 0.0, %v1004_v6 }
 0x2a9   : > { %v1006_v8 = vmul.f32 1.442695, %v1005_v7 }
 0x2ab   : > { %1221 = vpow2.f32 %v1006_v8 }
 0x2b8   : > { %v1222_v9 = vpop.eup %1221 }
 0x2b9   : > { %v1009_v10 = vadd.f32 1.0, %v1222_v9 }
 0x2bb   : > { %1223 = vrcp.f32 %v1009_v10 }
 0x2c8   : > { %v1224_v11 = vpop.eup %1223 }
 0x2c9   : > { %v1012_v12 = vmul.f32 %v1224_v11, %v1222_v9 }
 0x2cb   : > { %v1013_v13 = vsel %vm1008_vm7, %v1224_v11, %v1012_v12 }
 0x2cc   : > { %1015 = vst.msk [vmem:[%s428_s20] sm:$0x1] %vm1014_vm6, %v1013_v13 }
 0x2cd PF: > { %s19_s13 = sadd.s32 1, %s1263_s13   ;;  %s1540_s16 = sld [smem:[#allocation5_spill]] }
 0x2ce   : > { %p16_p9 = scmp.ge.s32.totalorder %s19_s13, 18   ;;  %s1541_s17 = sld [smem:[#allocation6_spill]] }
 0x2cf   : > { %s1542_s30 = smov %s1255_s11  ;;  %s1543_s10 = smov %s1259_s12 }
 0x2d0   :  { %18 = sbr.rel (!%p16_p9) target bundleno = 3 (0x3), region = 102 }
 0x2d3   : > { %s1544_s11 = smov %s1540_s16 }
 0x2d4   : > { %s1545_s12 = smov %s1541_s17 }

// kernel: _lambda_.3
= control target key start
LH: loop header
LB: loop body
LE: loop exit
PB: predicated region body
PF: predicated region fallthrough
CT: control target
= control target key end

     0   :  { %s656_s15 = smov 0   ;;  %s658_s16 = smov 0   ;;  %s716_s0 = inlined_call_operand.vmem [shape: f32[2,32,256], index: 0, kind: input, shape index: {}]   ;;  %s717_s1 = inlined_call_operand.vmem [shape: f32[2,32,256], index: 1, kind: input, shape index: {}]   ;;  %s718_s2 = inlined_call_operand.vmem [shape: f32[2,32,256], index: 2, kind: input, shape index: {}]   ;;  %s719_s3 = inlined_call_operand.vmem [shape: f32[2,3,256], index: 3, kind: input, shape index: {}]   ;;  %s720_s4 = inlined_call_operand.vmem [shape: f32[2,32,256], index: 4, kind: output, shape index: {}]  }
   0x1   :  { %s660_s17 = smov 0   ;;  %s662_s18 = smov 0  }
   0x2   :  { %s664_s19 = smov 0  }
   0x3 LB: > { %s23_s20 = sadd.s32 1, %s621_s17  ;;  %s26_s21 = sadd.s32 1, %s625_s18  ;;  %s629_s19 = sphi %s664_s19, %s14_s19   ;;  %s625_s18 = sphi %s662_s18, %s724_s18   ;;  %s621_s17 = sphi %s660_s17, %s723_s17   ;;  %s617_s16 = sphi %s658_s16, %s722_s16   ;;  %s613_s15 = sphi %s656_s15, %s721_s15  }
   0x4   : > { %p24_p0 = scmp.ge.s32.totalorder %s23_s20, 4  ;;  %p531_p1 = scmp.ge.s32.totalorder %s629_s19, 1 }
   0x5   : > { %p224_p2 = scmp.lt.s32.totalorder %s629_s19, 9 }
   0x6   : > { %s726_s20 = smov (%p24_p0, %s23_s20), 0  ;;  %s728_s21 = smov (!%p24_p0, %s26_s21), %s625_s18 }
   0x7   : > { %p225_p3 = pnand %p531_p1, %p224_p2  ;;  %p28_p4 = scmp.ge.s32.totalorder %s728_s21, 2 }
   0x8   : > { %p281_p5 = scmp.lt.s32.totalorder (!%p225_p3), %s617_s16, 1  ;;  %p283_p6 = scmp.lt.s32.totalorder (!%p225_p3), %s613_s15, 3 }
   0x9   : > { %s730_s21 = smov (%p28_p4, %s728_s21), 0  ;;  %228 = sbr.rel (%p225_p3) target bundleno = 29 (0x1d), region = 36 }
   0xe   : > { %v326_v0 = vlaneseq  ;;  %s732_s16 = smov (!%p281_p5, %s617_s16), 1  ;;  %s734_s15 = smov (!%p283_p6, %s613_s15), 3 }
   0xf   : > { %s533_s22 = sshll.u32 %s732_s16, 3  ;;  %s532_s23 = sshll.u32 %s734_s15, 1 }
  0x10   : > { %v327_v1 = vshrl.u32 %v326_v0, 7  ;;  %s312_s26 = scalar_lea.vmem %s719_s3, %s533_s22  ;;  %s287_s27 = sadd.s32 %s533_s22, %s532_s23 }
  0x11   : > { %v324_v4 = vld [vmem:[%s312_s26] ss:$4 sm:$0x3]  ;;  %v546_v5 = vld [vmem:[%s312_s26 + $0x1] ss:$4 sm:$0x3] }
  0x12   : > { %v328_v2 = vsub.s32 0, %v327_v1  ;;  %v332_v3 = vsub.s32 1, %v327_v1  ;;  %s534_s28 = sshll.u32 %s287_s27, 3  ;;  %v547_v8 = vld [vmem:[%s312_s26 + $0x2] ss:$4 sm:$0x3] }
  0x13   : > { %s289_s5 = scalar_lea.vmem %s716_s0, %s534_s28  ;;  %s298_s8 = scalar_lea.vmem %s717_s1, %s534_s28 }
  0x14   : > { %v329_v6 = vrot.slane %v324_v4, %v328_v2  ;;  %v346_v7 = vrot.slane %v546_v5, %v328_v2  ;;  %v333_v9 = vrot.slane %v324_v4, %v332_v3  ;;  %v350_v10 = vrot.slane %v546_v5, %v332_v3  ;;  %s307_s11 = scalar_lea.vmem %s718_s2, %s534_s28  ;;  %v322_v13 = vld [vmem:[%s289_s5] sm:$0xff]  ;;  %v323_v15 = vld [vmem:[%s289_s5 + $0x8] sm:$0xff]  ;;  %s321_s14 = scalar_lea.vmem %s720_s4, %s534_s28 }
  0x15   : > { %v365_v11 = vrot.slane %v547_v8, %v328_v2  ;;  %v369_v12 = vrot.slane %v547_v8, %v332_v3  ;;  %v338_v14 = vld [vmem:[%s298_s8] sm:$0xff]  ;;  %v339_v20 = vld [vmem:[%s298_s8 + $0x8] sm:$0xff] }
  0x16   : > { %v336_v16 = vmul.f32 %v329_v6, %v322_v13  ;;  %v353_v17 = vmul.f32 %v346_v7, %v338_v14  ;;  %v357_v18 = vld [vmem:[%s307_s11] sm:$0xff]  ;;  %v337_v19 = vmul.f32 %v333_v9, %v323_v15  ;;  %v358_v21 = vld [vmem:[%s307_s11 + $0x8] sm:$0xff]  ;;  %v354_v23 = vmul.f32 %v350_v10, %v339_v20 }
  0x17   : > { %v372_v22 = vmul.f32 %v365_v11, %v357_v18  ;;  %v373_v24 = vmul.f32 %v369_v12, %v358_v21 }
  0x18   : > { %v355_v25 = vadd.f32 %v353_v17, %v336_v16  ;;  %v356_v26 = vadd.f32 %v354_v23, %v337_v19 }
  0x1a   : > { %v374_v27 = vadd.f32 %v372_v22, %v355_v25  ;;  %v375_v28 = vadd.f32 %v373_v24, %v356_v26 }
  0x1c   : > { %376 = vst [vmem:[%s321_s14] sm:$0xff] %v374_v27  ;;  %377 = vst [vmem:[%s321_s14 + $0x8] sm:$0xff] %v375_v28 }
  0x1d PF: > { %s14_s19 = sadd.s32 1, %s629_s19   ;;  %s721_s15 = smov %s621_s17 }
  0x1e   : > { %p11_p7 = scmp.ge.s32.totalorder %s14_s19, 10   ;;  %s722_s16 = smov %s625_s18 }
  0x1f   : > { %s723_s17 = smov %s726_s20  ;;  %s724_s18 = smov %s730_s21 }
  0x20   :  { %13 = sbr.rel (!%p11_p7) target bundleno = 3 (0x3), region = 77 }

</bundles_post_ra>
